<compile_context>
chip_gen: v7x
topology: tpu7x:2x2x1
jax: 0.10.0
libtpu: 0.0.40
codegen_flags: <defaults>
</compile_context>

<pallas_src>
import functools
import math

import jax
import jax.numpy as jnp
from jax.experimental import pallas as pl
from jax.experimental.pallas import tpu as pltpu


def _round_up(x, m):
    return (x + m - 1) // m * m


def _pad2d(arr, rows, cols):
    return jnp.pad(arr, ((0, rows - arr.shape[0]), (0, cols - arr.shape[1])))


def sage_conv_kernel(a_ref, x_ref, invdeg_ref, ws_ref, wn_ref, b_ref, o_ref,
                     acc_ref, *, tm, tk, apply_relu):
    """One SAGEConv(mean) layer.

    grid = (row blocks, adjacency-column reduction blocks).
      a_ref      : (tm, tk)      int8 0/1 adjacency tile (streamed)
      x_ref      : (n_pad, f_in) bf16 features, VMEM-resident (constant index map)
      invdeg_ref : (tm, 1)       f32  1/in-degree for this row block
      ws_ref     : (f_in, f_out) bf16 W_self   (resident)
      wn_ref     : (f_in, f_out) bf16 W_neigh  (resident)
      b_ref      : (1, f_out)    f32  bias     (resident)
      acc_ref    : (tm, f_in)    f32  neighbor-sum accumulator (scratch)
    """
    i = pl.program_id(0)
    k = pl.program_id(1)

    @pl.when(k == 0)
    def _init():
        acc_ref[...] = jnp.zeros_like(acc_ref)

    # Neighbor-sum accumulation: acc += A01[i-block, k-block] @ X[k-block, :].
    # int8 -> bf16 cast is VPU work that hides under the A-tile DMA.
    x_blk = x_ref[pl.ds(pl.multiple_of(k * tk, tk), tk), :]
    a_blk = a_ref[...].astype(x_blk.dtype)
    acc_ref[...] += jnp.dot(a_blk, x_blk, preferred_element_type=jnp.float32)

    @pl.when(k == pl.num_programs(1) - 1)
    def _finalize():
        # Exact mean: f32 neighbor sum scaled by f32 1/deg, then bf16 for MXU.
        h_neigh = (acc_ref[...] * invdeg_ref[...]).astype(x_ref.dtype)
        x_self = x_ref[pl.ds(pl.multiple_of(i * tm, tm), tm), :]
        out = (jnp.dot(x_self, ws_ref[...], preferred_element_type=jnp.float32)
               + jnp.dot(h_neigh, wn_ref[...], preferred_element_type=jnp.float32)
               + b_ref[...])
        if apply_relu:
            out = jnp.maximum(out, 0.0)
        o_ref[...] = out.astype(o_ref.dtype)


def _vmem_limit_bytes(n_pad, f_in, f_out, tm, tk):
    """Rough double-buffered footprint, with margin, capped for v7x (64 MiB)."""
    need = (2 * tm * tk * 1            # A tiles (int8, double-buffered)
            + tm * tk * 2              # in-kernel bf16 cast temporary
            + 2 * n_pad * f_in * 2     # resident X (count 2 buffers to be safe)
            + 2 * tm * 1 * 4           # inv_deg
            + 2 * tm * f_out * 4       # output tile (f32 worst case)
            + tm * f_in * 4            # accumulator scratch
            + 2 * 2 * f_in * f_out * 2 # W_self + W_neigh
            + 2 * f_out * 4)           # bias
    return int(min(max(need * 3 // 2 + (4 << 20), 32 << 20), 48 << 20))


def _sage_conv_layer(a_i8, x_p, invdeg_p, w_self, w_neigh, bias,
                     *, apply_relu, out_dtype, tm, tk):
    n_pad = a_i8.shape[0]
    f_in = x_p.shape[1]
    f_out = w_self.shape[1]
    grid = (n_pad // tm, n_pad // tk)

    flops = 2 * n_pad * n_pad * f_in + 2 * 2 * n_pad * f_in * f_out
    bytes_accessed = (n_pad * n_pad                       # A, int8, streamed once
                      + n_pad * f_in * 2                  # resident X, loaded once
                      + n_pad * 4                         # inv_deg
                      + 2 * f_in * f_out * 2              # weights
                      + f_out * 4                         # bias
                      + n_pad * f_out * jnp.dtype(out_dtype).itemsize)

    # NOTE: if A-tile DMA is still exposed at very large N, consider
    # pipeline_mode=pl.Buffered(3) on the A BlockSpec only.
    return pl.pallas_call(
        functools.partial(sage_conv_kernel, tm=tm, tk=tk, apply_relu=apply_relu),
        out_shape=jax.ShapeDtypeStruct((n_pad, f_out), out_dtype),
        grid=grid,
        in_specs=[
            pl.BlockSpec((tm, tk), lambda i, k: (i, k)),            # A tile (int8)
            pl.BlockSpec((n_pad, f_in), lambda i, k: (0, 0)),       # X, VMEM-resident
            pl.BlockSpec((tm, 1), lambda i, k: (i, 0)),             # 1/deg (f32)
            pl.BlockSpec(w_self.shape, lambda i, k: (0, 0)),        # W_self resident
            pl.BlockSpec(w_neigh.shape, lambda i, k: (0, 0)),       # W_neigh resident
            pl.BlockSpec(bias.shape, lambda i, k: (0, 0)),          # bias resident
        ],
        out_specs=pl.BlockSpec((tm, f_out), lambda i, k: (i, 0)),
        scratch_shapes=[pltpu.VMEM((tm, f_in), jnp.float32)],       # neighbor-sum acc
        compiler_params=pltpu.CompilerParams(
            dimension_semantics=("parallel", "arbitrary"),
            vmem_limit_bytes=_vmem_limit_bytes(n_pad, f_in, f_out, tm, tk)),
        cost_estimate=pl.CostEstimate(flops=flops, transcendentals=0,
                                      bytes_accessed=bytes_accessed),
    )(a_i8, x_p, invdeg_p, w_self, w_neigh, bias)


def sage_forward(adj, x, w1_self, w1_neigh, b1, w2_self, w2_neigh, b2,
                 *, tm=256, tk=512):
    """2-layer GraphSAGE forward.

    adj: dense (N, N) adjacency, adj[i, j] != 0 iff j is an in-neighbor of i.
    tm/tk are row / reduction tile sizes; for very large N keep n_pad//tm an
    even number >= 4 so the 'parallel' row axis load-balances on v7x megacore,
    and keep resident X + tiles under ~48 MiB (v7x has 64 MiB VMEM).
    """
    n = x.shape[0]
    in_feats = x.shape[1]
    hid_feats = w1_self.shape[1]
    out_feats = w2_self.shape[1]

    n_pad = _round_up(n, math.lcm(tm, tk))
    fin_p = _round_up(in_feats, 128)
    hid_p = _round_up(hid_feats, 128)
    fout_p = _round_up(out_feats, 128)

    bf, f32 = jnp.bfloat16, jnp.float32

    adj01 = (adj != 0)
    deg = adj01.sum(axis=1).astype(f32)
    inv_deg = jnp.where(deg > 0, 1.0 / jnp.maximum(deg, 1.0), 0.0).reshape(-1, 1)

    a_i8 = _pad2d(adj01.astype(jnp.int8), n_pad, n_pad)     # raw 0/1 adjacency
    invdeg_p = _pad2d(inv_deg, n_pad, 1).astype(f32)
    x_p = _pad2d(x, n_pad, fin_p).astype(bf)                # zero padding -> mean unaffected

    w1s = _pad2d(w1_self, fin_p, hid_p).astype(bf)
    w1n = _pad2d(w1_neigh, fin_p, hid_p).astype(bf)
    b1_p = _pad2d(b1.reshape(1, -1), 1, hid_p).astype(f32)
    w2s = _pad2d(w2_self, hid_p, fout_p).astype(bf)
    w2n = _pad2d(w2_neigh, hid_p, fout_p).astype(bf)
    b2_p = _pad2d(b2.reshape(1, -1), 1, fout_p).astype(f32)

    h1 = _sage_conv_layer(a_i8, x_p, invdeg_p, w1s, w1n, b1_p,
                          apply_relu=True, out_dtype=bf, tm=tm, tk=tk)
    out = _sage_conv_layer(a_i8, h1, invdeg_p, w2s, w2n, b2_p,
                           apply_relu=False, out_dtype=f32, tm=tm, tk=tk)
    return out[:n, :out_feats]


# ----------------------------- references ---------------------------------

def sage_reference_f32(adj01, x, w1s, w1n, b1, w2s, w2n, b2):
    a = adj01.astype(jnp.float32)
    deg = jnp.clip(a.sum(axis=1, keepdims=True), 1.0, None)
    a_norm = a / deg
    h1 = x @ w1s + (a_norm @ x) @ w1n + b1
    h1 = jnp.maximum(h1, 0.0)
    return h1 @ w2s + (a_norm @ h1) @ w2n + b2


def sage_reference_bf16(adj01, x, w1s, w1n, b1, w2s, w2n, b2):
    """Mimics the kernel numerics: bf16 operands, f32 accumulation, exact
    0/1 adjacency with f32 1/deg scaling, bf16 hand-off between layers."""
    bf, f32 = jnp.bfloat16, jnp.float32
    a_b = adj01.astype(bf)
    deg = adj01.astype(f32).sum(axis=1, keepdims=True)
    inv_deg = jnp.where(deg > 0, 1.0 / jnp.maximum(deg, 1.0), 0.0)

    x_b = x.astype(bf)
    agg1 = (jnp.dot(a_b, x_b, preferred_element_type=f32) * inv_deg).astype(bf)
    h1 = (jnp.dot(x_b, w1s.astype(bf), preferred_element_type=f32)
          + jnp.dot(agg1, w1n.astype(bf), preferred_element_type=f32) + b1)
    h1 = jnp.maximum(h1, 0.0).astype(bf)

    agg2 = (jnp.dot(a_b, h1, preferred_element_type=f32) * inv_deg).astype(bf)
    return (jnp.dot(h1, w2s.astype(bf), preferred_element_type=f32)
            + jnp.dot(agg2, w2n.astype(bf), preferred_element_type=f32) + b2)


if __name__ == "__main__":
    key = jax.random.PRNGKey(0)
    keys = jax.random.split(key, 8)

    # Small synthetic problem (multi-row-block after padding to lcm(tm, tk)=512):
    N, IN_FEATS, HID_FEATS, OUT_FEATS = 300, 8, 32, 16

    # Deterministic random graph (dense 0/1 adjacency, ~30% density, no self loops)
    adj = (jax.random.uniform(keys[0], (N, N)) < 0.3).astype(jnp.float32)
    adj = adj * (1.0 - jnp.eye(N, dtype=jnp.float32))

    x = jax.random.normal(keys[1], (N, IN_FEATS), dtype=jnp.float32)

    def glorot(k, shape):
        fan_in, fan_out = shape
        lim = (6.0 / (fan_in + fan_out)) ** 0.5
        return jax.random.uniform(k, shape, jnp.float32, -lim, lim)

    w1_self = glorot(keys[2], (IN_FEATS, HID_FEATS))
    w1_neigh = glorot(keys[3], (IN_FEATS, HID_FEATS))
    b1 = 0.1 * jax.random.normal(keys[4], (HID_FEATS,), dtype=jnp.float32)
    w2_self = glorot(keys[5], (HID_FEATS, OUT_FEATS))
    w2_neigh = glorot(keys[6], (HID_FEATS, OUT_FEATS))
    b2 = 0.1 * jax.random.normal(keys[7], (OUT_FEATS,), dtype=jnp.float32)

    out = sage_forward(adj, x, w1_self, w1_neigh, b1, w2_self, w2_neigh, b2)
    out = jax.block_until_ready(out)

    adj01 = (adj != 0)
    ref_bf16 = sage_reference_bf16(adj01, x, w1_self, w1_neigh, b1,
                                   w2_self, w2_neigh, b2)
    ref_f32 = sage_reference_f32(adj01, x, w1_self, w1_neigh, b1,
                                 w2_self, w2_neigh, b2)

    assert out.shape == (N, OUT_FEATS)
    assert jnp.allclose(out, ref_bf16, atol=2e-2, rtol=2e-2), "mismatch vs bf16 ref"
    assert jnp.allclose(out, ref_f32, atol=1e-1, rtol=1e-1), "mismatch vs f32 ref"

    print("KERNEL_OK")
</pallas_src>

<mosaic_0001>
module attributes {stable_mosaic.version = 11 : i64} {
  func.func @sage_conv_kernel(%arg0: i32, %arg1: i32, %arg2: memref<256x512xi8, #tpu.memory_space<vmem>>, %arg3: memref<512x128xbf16, #tpu.memory_space<vmem>>, %arg4: memref<256x1xf32, #tpu.memory_space<vmem>>, %arg5: memref<128x128xbf16, #tpu.memory_space<vmem>>, %arg6: memref<128x128xbf16, #tpu.memory_space<vmem>>, %arg7: memref<1x128xf32, #tpu.memory_space<vmem>>, %arg8: memref<256x128xbf16, #tpu.memory_space<vmem>>, %arg9: memref<256x128xf32, #tpu.memory_space<vmem>>) attributes {dimension_semantics = [#tpu.dimension_semantics<parallel>, #tpu.dimension_semantics<arbitrary>], iteration_bounds = array<i64: 2, 1>, scalar_prefetch = 0 : i64, scratch_operands = 1 : i64, tpu.core_type = #tpu.core_type<tc>, window_params = [{transform_indices = @transform_0, window_bounds = array<i64: 256, 512>}, {pipeline_mode = #tpu.pipeline_mode<synchronous>, transform_indices = @transform_1, window_bounds = array<i64: 512, 128>}, {transform_indices = @transform_2, window_bounds = array<i64: 256, 1>}, {pipeline_mode = #tpu.pipeline_mode<synchronous>, transform_indices = @transform_3, window_bounds = array<i64: 128, 128>}, {pipeline_mode = #tpu.pipeline_mode<synchronous>, transform_indices = @transform_4, window_bounds = array<i64: 128, 128>}, {pipeline_mode = #tpu.pipeline_mode<synchronous>, transform_indices = @transform_5, window_bounds = array<i64: 1, 128>}, {transform_indices = @transform_6, window_bounds = array<i64: 256, 128>}]} {
    %c0_i32 = arith.constant 0 : i32
    %0 = arith.cmpi eq, %arg1, %c0_i32 : i32
    %1 = arith.extui %0 : i1 to i32
    %c0_i32_0 = arith.constant 0 : i32
    %2 = arith.cmpi ne, %1, %c0_i32_0 : i32
    scf.if %2 {
      %cst_9 = arith.constant 0.000000e+00 : f32
      %16 = vector.broadcast %cst_9 : f32 to vector<256x128xf32>
      %c0_10 = arith.constant 0 : index
      %c0_11 = arith.constant 0 : index
      %17 = vector.load %arg9[%c0_10, %c0_11] : memref<256x128xf32, #tpu.memory_space<vmem>>, vector<256x128xf32>
      tpu.vector_store %arg9[%c0_10, %c0_11], %16 {strides = array<i32>} : memref<256x128xf32, #tpu.memory_space<vmem>>, vector<256x128xf32>,
    } else {
    }
    %c512_i32 = arith.constant 512 : i32
    %3 = arith.muli %arg1, %c512_i32 : i32
    %4 = tpu.assume_multiple %3, 512 : i32
    %5 = arith.index_cast %4 : i32 to index
    %c0 = arith.constant 0 : index
    %6 = vector.load %arg3[%5, %c0] : memref<512x128xbf16, #tpu.memory_space<vmem>>, vector<512x128xbf16>
    %c0_1 = arith.constant 0 : index
    %c0_2 = arith.constant 0 : index
    %7 = vector.load %arg2[%c0_1, %c0_2] : memref<256x512xi8, #tpu.memory_space<vmem>>, vector<256x512xi8>
    %8 = arith.sitofp %7 : vector<256x512xi8> to vector<256x512xbf16>
    %c0_3 = arith.constant 0 : index
    %c0_4 = arith.constant 0 : index
    %9 = vector.load %arg9[%c0_3, %c0_4] : memref<256x128xf32, #tpu.memory_space<vmem>>, vector<256x128xf32>
    %cst = arith.constant dense<0.000000e+00> : vector<256x128xf32>
    %10 = tpu.matmul %8, %6, %cst {dimension_numbers = #tpu.dot_dimension_numbers<[1], [0], [0], [1], [0, 0, 1, 1], [], []>} : vector<256x512xbf16>, vector<512x128xbf16>, vector<256x128xf32> -> vector<256x128xf32>
    %11 = arith.addf %9, %10 : vector<256x128xf32>
    %c0_5 = arith.constant 0 : index
    %c0_6 = arith.constant 0 : index
    %12 = vector.load %arg9[%c0_5, %c0_6] : memref<256x128xf32, #tpu.memory_space<vmem>>, vector<256x128xf32>
    tpu.vector_store %arg9[%c0_5, %c0_6], %11 {strides = array<i32>} : memref<256x128xf32, #tpu.memory_space<vmem>>, vector<256x128xf32>,
    %c0_i32_7 = arith.constant 0 : i32
    %13 = arith.cmpi eq, %arg1, %c0_i32_7 : i32
    %14 = arith.extui %13 : i1 to i32
    %c0_i32_8 = arith.constant 0 : i32
    %15 = arith.cmpi ne, %14, %c0_i32_8 : i32
    scf.if %15 {
      %c0_9 = arith.constant 0 : index
      %c0_10 = arith.constant 0 : index
      %16 = vector.load %arg9[%c0_9, %c0_10] : memref<256x128xf32, #tpu.memory_space<vmem>>, vector<256x128xf32>
      %c0_11 = arith.constant 0 : index
      %c0_12 = arith.constant 0 : index
      %17 = vector.load %arg4[%c0_11, %c0_12] : memref<256x1xf32, #tpu.memory_space<vmem>>, vector<256x1xf32>
      %18 = vector.broadcast %17 : vector<256x1xf32> to vector<256x128xf32>
      %19 = arith.mulf %16, %18 : vector<256x128xf32>
      %20 = arith.truncf %19 : vector<256x128xf32> to vector<256x128xbf16>
      %c256_i32 = arith.constant 256 : i32
      %21 = arith.muli %arg0, %c256_i32 : i32
      %22 = tpu.assume_multiple %21, 256 : i32
      %23 = arith.index_cast %22 : i32 to index
      %c0_13 = arith.constant 0 : index
      %24 = vector.load %arg3[%23, %c0_13] : memref<512x128xbf16, #tpu.memory_space<vmem>>, vector<256x128xbf16>
      %c0_14 = arith.constant 0 : index
      %c0_15 = arith.constant 0 : index
      %25 = vector.load %arg5[%c0_14, %c0_15] : memref<128x128xbf16, #tpu.memory_space<vmem>>, vector<128x128xbf16>
      %cst_16 = arith.constant dense<0.000000e+00> : vector<256x128xf32>
      %26 = tpu.matmul %24, %25, %cst_16 {dimension_numbers = #tpu.dot_dimension_numbers<[1], [0], [0], [1], [0, 0, 1, 1], [], []>} : vector<256x128xbf16>, vector<128x128xbf16>, vector<256x128xf32> -> vector<256x128xf32>
      %c0_17 = arith.constant 0 : index
      %c0_18 = arith.constant 0 : index
      %27 = vector.load %arg6[%c0_17, %c0_18] : memref<128x128xbf16, #tpu.memory_space<vmem>>, vector<128x128xbf16>
      %cst_19 = arith.constant dense<0.000000e+00> : vector<256x128xf32>
      %28 = tpu.matmul %20, %27, %cst_19 {dimension_numbers = #tpu.dot_dimension_numbers<[1], [0], [0], [1], [0, 0, 1, 1], [], []>} : vector<256x128xbf16>, vector<128x128xbf16>, vector<256x128xf32> -> vector<256x128xf32>
      %29 = arith.addf %26, %28 : vector<256x128xf32>
      %c0_20 = arith.constant 0 : index
      %c0_21 = arith.constant 0 : index
      %30 = vector.load %arg7[%c0_20, %c0_21] : memref<1x128xf32, #tpu.memory_space<vmem>>, vector<1x128xf32>
      %31 = vector.broadcast %30 : vector<1x128xf32> to vector<256x128xf32>
      %32 = arith.addf %29, %31 : vector<256x128xf32>
      %cst_22 = arith.constant 0.000000e+00 : f32
      %33 = vector.broadcast %cst_22 : f32 to vector<256x128xf32>
      %34 = arith.maximumf %32, %33 : vector<256x128xf32>
      %35 = arith.truncf %34 : vector<256x128xf32> to vector<256x128xbf16>
      %c0_23 = arith.constant 0 : index
      %c0_24 = arith.constant 0 : index
      %36 = vector.load %arg8[%c0_23, %c0_24] : memref<256x128xbf16, #tpu.memory_space<vmem>>, vector<256x128xbf16>
      tpu.vector_store %arg8[%c0_23, %c0_24], %35 {strides = array<i32>} : memref<256x128xbf16, #tpu.memory_space<vmem>>, vector<256x128xbf16>,
    } else {
    }
    return
  }
  func.func @transform_0(%arg0: i32, %arg1: i32) -> (i32, i32) {
    %c0_i32 = arith.constant 0 : i32
    return %arg0, %arg1 : i32, i32
  }
  func.func @transform_1(%arg0: i32, %arg1: i32) -> (i32, i32) {
    %c0_i32 = arith.constant 0 : i32
    %c0_i32_0 = arith.constant 0 : i32
    %c0_i32_1 = arith.constant 0 : i32
    return %c0_i32, %c0_i32_0 : i32, i32
  }
  func.func @transform_2(%arg0: i32, %arg1: i32) -> (i32, i32) {
    %c0_i32 = arith.constant 0 : i32
    %c0_i32_0 = arith.constant 0 : i32
    return %arg0, %c0_i32 : i32, i32
  }
  func.func @transform_3(%arg0: i32, %arg1: i32) -> (i32, i32) {
    %c0_i32 = arith.constant 0 : i32
    %c0_i32_0 = arith.constant 0 : i32
    %c0_i32_1 = arith.constant 0 : i32
    return %c0_i32, %c0_i32_0 : i32, i32
  }
  func.func @transform_4(%arg0: i32, %arg1: i32) -> (i32, i32) {
    %c0_i32 = arith.constant 0 : i32
    %c0_i32_0 = arith.constant 0 : i32
    %c0_i32_1 = arith.constant 0 : i32
    return %c0_i32, %c0_i32_0 : i32, i32
  }
  func.func @transform_5(%arg0: i32, %arg1: i32) -> (i32, i32) {
    %c0_i32 = arith.constant 0 : i32
    %c0_i32_0 = arith.constant 0 : i32
    %c0_i32_1 = arith.constant 0 : i32
    return %c0_i32, %c0_i32_0 : i32, i32
  }
  func.func @transform_6(%arg0: i32, %arg1: i32) -> (i32, i32) {
    %c0_i32 = arith.constant 0 : i32
    %c0_i32_0 = arith.constant 0 : i32
    return %arg0, %c0_i32 : i32, i32
  }
}

</mosaic_0001>

<bundles_post_ra>
// kernel: tpu_custom_call.1
= control target key start
LH: loop header
LB: loop body
LE: loop exit
PB: predicated region body
PF: predicated region fallthrough
CT: control target
= control target key end

     0   :  { %s3887_s0 = inlined_call_operand.vmem [shape: s8[512,512], index: 0, kind: input, shape index: {}]   ;;  %s3888_s1 = inlined_call_operand.hbm [shape: bf16[512,128], index: 1, kind: input, shape index: {}]   ;;  %s3889_s2 = inlined_call_operand.vmem [shape: f32[512,1], index: 2, kind: input, shape index: {}]   ;;  %s3890_s3 = inlined_call_operand.hbm [shape: bf16[128,128], index: 3, kind: input, shape index: {}]   ;;  %s3891_s4 = inlined_call_operand.hbm [shape: bf16[128,128], index: 4, kind: input, shape index: {}]   ;;  %s3892_s5 = inlined_call_operand.vmem [shape: f32[1,128], index: 5, kind: input, shape index: {}]   ;;  %s3893_s6 = inlined_call_operand.hbm [shape: bf16[512,128], index: 6, kind: output, shape index: {}]  }
   0x1   :  { %3900 = sst [smem:[#allocation16_spill]] %s3890_s3 }
   0x2   :  { %11 = vsyncpa [#allocation4], 0 }
   0x3   :  { %12 = vsyncpa [#allocation7], 0 }
   0x4   :  { %13 = vsyncpa [#allocation5], 0 }
   0x5   :  { %15 = vsyncpa [#allocation5 + $0x1], 0  ;;  %s3427_s21 = smov 0   ;;  %s3429_s22 = smov 0  }
   0x6   :  { %s3431_s23 = smov 0   ;;  %s3433_s24 = smov 0  }
   0x7   :  { %s3435_s25 = smov 0   ;;  %s3437_s26 = smov 0  }
   0x8 LB: > { %3901 = sst [smem:[#allocation13_spill]] %s3377_s25  ;;  %s2388_s27 = sadd.s32 4294967295, %s3381_s26   ;;  %s3381_s26 = sphi %s3437_s26, %s21_s26   ;;  %s3377_s25 = sphi %s3435_s25, %s3917_s25   ;;  %s3373_s24 = sphi %s3433_s24, %s3916_s24   ;;  %s3369_s23 = sphi %s3431_s23, %s3920_s23   ;;  %s3365_s22 = sphi %s3429_s22, %s3919_s22   ;;  %s3361_s21 = sphi %s3427_s21, %s3918_s21  }
   0x9   : > { %s2389_s28 = sadd.s32 4294967294, %s3381_s26   ;;  %s33_s29 = sadd.s32 1, %s3377_s25 }
   0xa   : > { %s178_s30 = sadd.s32 1, %s3369_s23  ;;  %p35_p0 = scmp.ge.s32.totalorder %s33_s29, 2 }
   0xb   : > { %p188_p1 = scmp.ne.s32.totalorder %s3369_s23, %s3365_s22  ;;  %p189_p2 = scmp.eq.s32.totalorder %s2388_s27, 1 }
   0xc   : > { %p194_p3 = scmp.ne.s32.totalorder %s3365_s22, %s3361_s21  ;;  %s3922_s29 = smov (%p35_p0, %s33_s29), 0 }
   0xd   : > { %3902 = sst [smem:[#allocation14_spill]] %s3922_s29  ;;  %p3467_p4 = por %p189_p2, %p188_p1 }
   0xe   : > { %p195_p5 = scmp.eq.s32.totalorder %s2389_s28, 1  ;;  %s175_s8 = ssub.s32 %s3377_s25, %s3922_s29 }
   0xf   : > { %s3903_s7 = scalar_select %p3467_p4, 1, 0 }
  0x10   : > { %p2390_p6 = scmp.ge.s32.totalorder %s3381_s26, 1  ;;  %p176_p7 = scmp.eq.s32.totalorder %s175_s8, 0 }
  0x11   : > { %p3474_p8 = por %p195_p5, %p194_p3  ;;  %p202_p9 = scmp.lt.s32.totalorder %s3381_s26, 3 }
  0x12   : > { %s3480_s10 = scalar_select %p176_p7, %s3369_s23, %s178_s30  }
  0x13   : > { %s3904_s9 = scalar_select %p3474_p8, 1, 0 }
  0x14   : > { %3905 = sst [smem:[#allocation15_spill]] %s3480_s10  ;;  %p3482_p10 = pnand %p2390_p6, %p202_p9 }
  0x15   : > { %p3486_p11 = scmp.eq.s32.totalorder %s2388_s27, 0  ;;  %s3383_s13 = smov [#allocation6]  }
  0x16   : > { %s3906_s11 = scalar_select %p3482_p10, 1, 0 }
  0x17   : > { %s3907_s12 = scalar_select %p3486_p11, 1, 0 }
  0x18   : > { %p3068_p12 = pneg %p3482_p10  ;;  %s227_s14 = sshll.u32 %s3383_s13, 4  ;;  %s228_s14 = int_to_ptr.vmem [resolvable:$true] %s227_s14 }
  0x19   : > { %s3384_s16 = smov [#allocation3]   ;;  %s3909_s3 = sld [smem:[#allocation16_spill]] }
  0x1a   : > { %p3494_p13 = pnand %p3486_p11, %p3068_p12  ;;  %s214_s17 = sshll.u32 %s3384_s16, 4  ;;  %s215_s17 = int_to_ptr.vmem [resolvable:$true] %s214_s17 }
  0x1c   : > { %p3506_p1 = pneg %p3494_p13 }
  0x1f   : > { %s3211_s20 = scalar_lea.hbm %s3909_s3, 1024 }
  0x20   : > { %p3212_p0 = scmp.ne.s32.totalorder %s3909_s3, %s3211_s20  ;;  %p3218_p5 = scmp.lt.u32.totalorder %s3211_s20, %s3909_s3 }
  0x22   : > { %p3214_p2 = pnand %p3506_p1, %p3212_p0 }
  0x24   : > { %p3215_p3 = pneg %p3214_p2 }
  0x26   : > { %p3220_p6 = pnand %p3218_p5, %p3215_p3 }
  0x28   : > { %3223 = shalt.err (!%p3220_p6)
}
  0x29   : > { %s3224_s16 = scalar_lea.vmem %s228_s14, 1024  ;;  %p3232_p8 = scmp.lt.s32.totalorder %s228_s14, %s228_s14 }
  0x2a   : > { %p3225_p7 = scmp.ne.s32.totalorder %s228_s14, %s3224_s16  ;;  %p3233_p4 = scmp.lt.s32.totalorder %s3224_s16, %s3224_s16 }
  0x2c   : > { %p3227_p9 = pnand %p3225_p7, %p3506_p1  ;;  %p3234_p11 = por %p3233_p4, %p3232_p8 }
  0x2e   : > { %p3228_p12 = pneg %p3227_p9 }
  0x30   : > { %p3235_p10 = pnand %p3234_p11, %p3228_p12 }
  0x32   : > { %3238 = shalt.err (!%p3235_p10)
}
  0x33   : > { %s3385_s18 = smov 64   ;;  %s3386_s19 = smov 4  }
  0x34   : > { %3074 = dma.hbm_to_vmem [thread:$0]  (!%p3494_p13), %s3909_s3, 1024, %s228_s14, [#allocation7], %s3385_s18, %s3385_s18, %s3386_s19  }
  0x35   : > { %s3239_s13 = scalar_lea.hbm %s3888_s1, 4096 }
  0x36   : > { %p3240_p4 = scmp.ne.s32.totalorder %s3888_s1, %s3239_s13  ;;  %p3246_p11 = scmp.lt.u32.totalorder %s3239_s13, %s3888_s1 }
  0x38   : > { %p3242_p8 = pnand %p3240_p4, %p3506_p1 }
  0x3a   : > { %p3243_p10 = pneg %p3242_p8 }
  0x3c   : > { %p3248_p0 = pnand %p3246_p11, %p3243_p10 }
  0x3e   : > { %3251 = shalt.err (!%p3248_p0)
}
  0x3f   : > { %s3252_s20 = scalar_lea.vmem %s215_s17, 4096  ;;  %p3260_p6 = scmp.lt.s32.totalorder %s215_s17, %s215_s17 }
  0x40   : > { %p3253_p2 = scmp.ne.s32.totalorder %s215_s17, %s3252_s20  ;;  %p3261_p7 = scmp.lt.s32.totalorder %s3252_s20, %s3252_s20 }
  0x42   : > { %p3255_p3 = pnand %p3253_p2, %p3506_p1  ;;  %p3262_p9 = por %p3261_p7, %p3260_p6 }
  0x44   : > { %p3256_p5 = pneg %p3255_p3 }
  0x46   : > { %p3263_p12 = pnand %p3262_p9, %p3256_p5 }
  0x48   : > { %3266 = shalt.err (!%p3263_p12)
}
  0x49   : > { %3071 = dma.hbm_to_vmem [thread:$0]  (!%p3494_p13), %s3888_s1, 4096, %s215_s17, [#allocation4], %s3385_s18, %s3385_s18, %s3386_s19  }
  0x4a   : > { %s3387_s10 = smov [#allocation8]   ;;  %s3267_s8 = scalar_lea.hbm %s3891_s4, 1024 }
  0x4b   : > { %s240_s14 = sshll.u32 %s3387_s10, 4  ;;  %p3268_p4 = scmp.ne.s32.totalorder %s3891_s4, %s3267_s8  ;;  %s241_s14 = int_to_ptr.vmem [resolvable:$true] %s240_s14 }
  0x4c   : > { %p3274_p11 = scmp.lt.u32.totalorder %s3267_s8, %s3891_s4 }
  0x4d   : > { %p3270_p8 = pnand %p3268_p4, %p3506_p1 }
  0x4f   : > { %p3271_p10 = pneg %p3270_p8 }
  0x51   : > { %p3276_p0 = pnand %p3274_p11, %p3271_p10 }
  0x53   : > { %3279 = shalt.err (!%p3276_p0)
}
  0x54   : > { %s3280_s17 = scalar_lea.vmem %s241_s14, 1024  ;;  %p3288_p6 = scmp.lt.s32.totalorder %s241_s14, %s241_s14 }
  0x55   : > { %p3281_p2 = scmp.ne.s32.totalorder %s241_s14, %s3280_s17  ;;  %p3289_p7 = scmp.lt.s32.totalorder %s3280_s17, %s3280_s17 }
  0x57   : > { %p3283_p3 = pnand %p3281_p2, %p3506_p1  ;;  %p3290_p9 = por %p3289_p7, %p3288_p6 }
  0x59   : > { %p3284_p5 = pneg %p3283_p3 }
  0x5b   : > { %p3291_p12 = pnand %p3290_p9, %p3284_p5 }
  0x5d   : > { %3294 = shalt.err (!%p3291_p12)
}
  0x5e   : > { %3077 = dma.hbm_to_vmem [thread:$0]  (!%p3494_p13), %s3891_s4, 1024, %s241_s14, [#allocation7], %s3385_s18, %s3385_s18, %s3386_s19  }
  0x5f   : > { %p3911_p4 = scmp.ne.s32.totalorder %s3906_s11, 0 }
  0x60   : > { %p3912_p1 = scmp.ne.s32.totalorder (!%p3911_p4), %s3907_s12, 0 }
  0x61   : > { %283 = sbr.rel (%p3911_p4) target bundleno = 847 (0x34f), region = 44 }
  0x68   : > { %3348 = dma.done.wait (%p3912_p1), [#allocation4], 4096  }
  0x69   : > { %3350 = vsyncadd (%p3912_p1), [#allocation4], 4294963200 }
  0x6a   : > { %3352 = dma.done.wait (%p3912_p1), [#allocation7], 2048  }
  0x6b   : > { %3354 = vsyncadd (%p3912_p1), [#allocation7], 4294965248  ;;  %s2400_s15 = sshll.u32 %s3373_s24, 3  ;;  %v3147_v0 = vld [vmem:[#allocation3 + $0x40] sm:$0xff]   ;;  %v3149_v2 = vld [vmem:[#allocation3 + $0x48] sm:$0xff]   ;;  %s2403_s19 = sshll.u32 %s3373_s24, 5 }
  0x6c   : > { %v3148_v1 = vld [vmem:[#allocation3] sm:$0xff]   ;;  %3006 = vmatprep.subr.bf16.mxu1 %v3147_v0  ;;  %p333_p13 = scmp.lt.s32.totalorder %s2400_s15, 15  ;;  %2638 = vmatprep.subr.bf16.mxu0 %v3147_v0  ;;  %v3150_v3 = vld [vmem:[#allocation3 + $0x8] sm:$0xff]   ;;  %v3151_v4 = vld [vmem:[#allocation3 + $0x50] sm:$0xff]   ;;  %p344_p8 = scmp.lt.s32.totalorder %s2403_s19, 63  ;;  %v3388_v52 = vmov 0  }
  0x6d   : > { %3014 = vmatpush3.bf16.msra.mxu1 %v3148_v1  ;;  %2639 = vmatpush3.bf16.msra.mxu0 %v3148_v1  ;;  %v3152_v5 = vld [vmem:[#allocation3 + $0x10] sm:$0xff]   ;;  %v3153_v6 = vld [vmem:[#allocation3 + $0x58] sm:$0xff]   ;;  %v3155_v8 = vld [vmem:[#allocation3 + $0x60] sm:$0xff]   ;;  %s2437_s28 = sshll.u32 %s3373_s24, 8  ;;  %s328_s3 = sand.u32 1, %s3365_s22  }
  0x6e   : > { %3007 = vmatprep.subr.bf16.mxu1 %v3149_v2  ;;  %2640 = vmatprep.subr.bf16.mxu0 %v3149_v2  ;;  %s3924_s15 = smov (!%p333_p13, %s2400_s15), 15  ;;  %v3154_v7 = vld [vmem:[#allocation3 + $0x18] sm:$0xff]   ;;  %v3156_v9 = vld [vmem:[#allocation3 + $0x20] sm:$0xff]   ;;  %v3157_v10 = vld [vmem:[#allocation3 + $0x68] sm:$0xff]   ;;  %s3926_s19 = smov (!%p344_p8, %s2403_s19), 63 }
  0x6f   : > { %s2509_s11 = sshll.u32 %s3924_s15, 5  ;;  %v3158_v13 = vld [vmem:[#allocation3 + $0x28] sm:$0xff]   ;;  %v3159_v14 = vld [vmem:[#allocation3 + $0x70] sm:$0xff]   ;;  %v3161_v16 = vld [vmem:[#allocation3 + $0x78] sm:$0xff]   ;;  %3145 = vset.pattern.permute.xlu0 %v3388_v52  ;;  %3146 = vset.pattern.permute.xlu1 %v3388_v52  ;;  %s2404_s29 = sshll.u32 %s3926_s19, 3 }
  0x70   : > { %s3581_s18 = scalar_lea.vmem %s3887_s0, %s2509_s11  ;;  %v3160_v15 = vld [vmem:[#allocation3 + $0x30] sm:$0xff]   ;;  %v3162_v17 = vld [vmem:[#allocation3 + $0x38] sm:$0xff]   ;;  %v3163_v19 = vld [vmem:[#allocation3 + $0xc0] sm:$0xff]   ;;  %s3596_s27 = scalar_lea.vmem %s3889_s2, %s2404_s29 }
  0x71   : > { %3015 = vmatpush3.bf16.msra.mxu1 %v3150_v3  ;;  %2641 = vmatpush3.bf16.msra.mxu0 %v3150_v3  ;;  %v473_v11 = vld [vmem:[%s3581_s18 + $0x88] sm:$0xff]  ;;  %v472_v18 = vld [vmem:[%s3581_s18 + $0x80] sm:$0xff]  ;;  %v3167_v30 = vld [vmem:[#allocation3 + $0xd0] sm:$0xff]   ;;  %s1438_s8 = sshra.s32 %s2437_s28, 3  ;;  %s2399_s25 = sshll.u32 %s328_s3, 7 }
  0x72   : > { %3008 = vmatprep.subr.bf16.mxu1 %v3151_v4  ;;  %2642 = vmatprep.subr.bf16.mxu0 %v3151_v4  ;;  %v521_v12 = vunpack.c.l.s8.bf16 %v473_v11  ;;  %v520_v20 = vunpack.c.l.s8.bf16 %v472_v18  ;;  %v525_v21 = vunpack.c.h.s8.bf16 %v473_v11  ;;  %v3164_v22 = vld [vmem:[#allocation3 + $0x80] sm:$0xff]   ;;  %v3165_v23 = vld [vmem:[#allocation3 + $0xc8] sm:$0xff]   ;;  %v524_v32 = vunpack.c.h.s8.bf16 %v472_v18  ;;  %v3168_v34 = vld [vmem:[#allocation3 + $0x90] sm:$0xff]   ;;  %s2438_s13 = sshll.u32 %s1438_s8, 2  ;;  %s3784_s15 = scalar_lea.vmem [#allocation9], %s2399_s25 }
  0x73   : > { %v457_v24 = vld [vmem:[%s3581_s18 + $0x8] sm:$0xff]  ;;  %v456_v28 = vld [vmem:[%s3581_s18] sm:$0xff]  ;;  %v3169_v35 = vld [vmem:[#allocation3 + $0xd8] sm:$0xff]   ;;  %s3723_s16 = scalar_lea.vmem [#allocation3], %s2438_s13  ;;  %s2542_s11 = sshll.u32 %s3373_s24, 11 }
  0x74   : > { %872 = vmatprep.mubr.bf16.mxu1 %v521_v12  ;;  %v3166_v25 = vld [vmem:[#allocation3 + $0x88] sm:$0xff]   ;;  %v489_v26 = vunpack.c.l.s8.bf16 %v457_v24  ;;  %v493_v27 = vunpack.c.h.s8.bf16 %v457_v24  ;;  %v488_v31 = vunpack.c.l.s8.bf16 %v456_v28  ;;  %v476_v37 = vld [vmem:[%s3581_s18 + $0xa0] sm:$0xff]  ;;  %v3170_v38 = vld [vmem:[#allocation3 + $0x98] sm:$0xff]   ;;  %v492_v39 = vunpack.c.h.s8.bf16 %v456_v28  ;;  %s2265_s12 = sshll.u32 %s3784_s15, 4  ;;  %s3833_s19 = scalar_lea.hbm %s3893_s6, %s2542_s11  ;;  %s3835_s12 = int_to_ptr.vmem [resolvable:$true] %s2265_s12 }
  0x75   : > { %3016 = vmatpush3.bf16.msra.mxu1 %v3152_v5  ;;  %2643 = vmatpush3.bf16.msra.mxu0 %v3152_v5  ;;  %v477_v29 = vld [vmem:[%s3581_s18 + $0xa8] sm:$0xff]  ;;  %v3171_v40 = vld [vmem:[#allocation3 + $0xe0] sm:$0xff]   ;;  %v528_v44 = vunpack.c.l.s8.bf16 %v476_v37  ;;  %v3175_v51 = vld [vmem:[#allocation3 + $0xf0] sm:$0xff]   ;;  %v532_v53 = vunpack.c.h.s8.bf16 %v476_v37  ;;  %s3841_s24 = scalar_lea.sflag [#allocation5], %s328_s3  ;;  %s3295_s29 = scalar_lea.vmem %s3835_s12, 2048 }
  0x76   : > { %3009 = vmatprep.subr.bf16.mxu1 %v3153_v6  ;;  %2644 = vmatprep.subr.bf16.mxu0 %v3153_v6  ;;  %v529_v33 = vunpack.c.l.s8.bf16 %v477_v29  ;;  %v461_v36 = vld [vmem:[%s3581_s18 + $0x28] sm:$0xff]  ;;  %v3172_v42 = vld [vmem:[#allocation3 + $0xa0] sm:$0xff]   ;;  %v533_v46 = vunpack.c.h.s8.bf16 %v477_v29  ;;  %v3176_v55 = vld [vmem:[#allocation3 + $0xb0] sm:$0xff]   ;;  %p3296_p10 = scmp.ne.s32.totalorder %s3835_s12, %s3295_s29  ;;  %p3913_p11 = scmp.ne.s32.totalorder %s3903_s7, 0 }
  0x77   : > { %808 = vmatprep.mubr.bf16.mxu0 %v489_v26  ;;  %v497_v41 = vunpack.c.l.s8.bf16 %v461_v36  ;;  %v460_v43 = vld [vmem:[%s3581_s18 + $0x20] sm:$0xff]  ;;  %v3173_v45 = vld [vmem:[#allocation3 + $0xe8] sm:$0xff]   ;;  %v501_v50 = vunpack.c.h.s8.bf16 %v461_v36  ;;  %v3177_v56 = vld [vmem:[#allocation3 + $0xf8] sm:$0xff]   ;;  %s3389_s10 = smov [#allocation9]  }
  0x78   : > { %v3174_v47 = vld [vmem:[#allocation3 + $0xa8] sm:$0xff]   ;;  %v496_v49 = vunpack.c.l.s8.bf16 %v460_v43  ;;  %v1197_v58 = vld [vmem:[%s3596_s27] sm:$0xff]  ;;  %v500_v59 = vunpack.c.h.s8.bf16 %v460_v43  ;;  %v1199_v61 = vld [vmem:[%s3596_s27 + $0x10] sm:$0xff]  ;;  %p3297_p0 = pnand %p3296_p10, %p3913_p11  ;;  %s3299_s14 = sshll.u32 %s3389_s10, 4  ;;  %s3300_s14 = int_to_ptr.vmem [resolvable:$false] %s3299_s14 }
  0x79   : > { %3017 = vmatpush3.bf16.msra.mxu1 %v3154_v7  ;;  %2645 = vmatpush3.bf16.msra.mxu0 %v3154_v7  ;;  %v481_v48 = vld [vmem:[%s3581_s18 + $0xc8] sm:$0xff]  ;;  %v480_v62 = vld [vmem:[%s3581_s18 + $0xc0] sm:$0xff]  ;;  %v3178_v63 = vld [vmem:[#allocation3 + $0xb8] sm:$0xff]   ;;  %p3302_p3 = scmp.lt.s32.totalorder %s3835_s12, %s3300_s14 }
  0x7a   : > { %3010 = vmatprep.subr.bf16.mxu1 %v3155_v8  ;;  %2646 = vmatprep.subr.bf16.mxu0 %v3155_v8  ;;  %v537_v54 = vunpack.c.l.s8.bf16 %v481_v48  ;;  %v465_v57 = vld [vmem:[%s3581_s18 + $0x48] sm:$0xff]  ;;  %v1200_v1 = vld [vmem:[%s3596_s27 + $0x18] sm:$0xff]  ;;  %v536_v2 = vunpack.c.l.s8.bf16 %v480_v62  ;;  %v541_v3 = vunpack.c.h.s8.bf16 %v481_v48  ;;  %v464_v4 = vld [vmem:[%s3581_s18 + $0x40] sm:$0xff]  ;;  %v540_v12 = vunpack.c.h.s8.bf16 %v480_v62  ;;  %p3298_p2 = pneg %p3297_p0 }
  0x7b   : > { %1231 = vperm.xlu0 %3145, %v1197_v58   ;;  %v1198_v60 = vld [vmem:[%s3596_s27 + $0x8] sm:$0xff]  ;;  %v505_v0 = vunpack.c.l.s8.bf16 %v465_v57  ;;  %1241 = vperm.xlu1 %3146, %v1199_v61   ;;  %v504_v5 = vunpack.c.l.s8.bf16 %v464_v4  ;;  %v1201_v6 = vld [vmem:[%s3596_s27 + $0x20] sm:$0xff]  ;;  %v509_v8 = vunpack.c.h.s8.bf16 %v465_v57  ;;  %v1204_v11 = vld [vmem:[%s3596_s27 + $0x38] sm:$0xff] }
  0x7c   : > { %v1202_v7 = vld [vmem:[%s3596_s27 + $0x28] sm:$0xff]  ;;  %v484_v18 = vld [vmem:[%s3581_s18 + $0xe0] sm:$0xff]  ;;  %v459_v29 = vld [vmem:[%s3581_s18 + $0x18] sm:$0xff] }
  0x7d   : > { %3018 = vmatpush3.bf16.msra.mxu1 %v3156_v9  ;;  %2647 = vmatpush3.bf16.msra.mxu0 %v3156_v9  ;;  %v485_v9 = vld [vmem:[%s3581_s18 + $0xe8] sm:$0xff]  ;;  %v468_v24 = vld [vmem:[%s3581_s18 + $0x60] sm:$0xff]  ;;  %v458_v37 = vld [vmem:[%s3581_s18 + $0x10] sm:$0xff] }
  0x7e   : > { %3011 = vmatprep.subr.bf16.mxu1 %v3157_v10  ;;  %2648 = vmatprep.subr.bf16.mxu0 %v3157_v10  ;;  %v1203_v10 = vld [vmem:[%s3596_s27 + $0x30] sm:$0xff]  ;;  %v1209_v26 = vld [vmem:[%s3596_s27 + $0x60] sm:$0xff]  ;;  %v1214_v36 = vld [vmem:[%s3596_s27 + $0x88] sm:$0xff] }
  0x7f   : > { %1236 = vperm.xlu0 %3145, %v1198_v60   ;;  %1246 = vperm.xlu1 %3146, %v1200_v1   ;;  %v1218_v43 = vld [vmem:[%s3596_s27 + $0xa8] sm:$0xff]  ;;  %v1223_v52 = vld [vmem:[%s3596_s27 + $0xd0] sm:$0xff]  ;;  %v467_v57 = vld [vmem:[%s3581_s18 + $0x58] sm:$0xff] }
  0x80   : > { %v1226_v58 = vld [vmem:[%s3596_s27 + $0xe8] sm:$0xff]  ;;  %v507_v60 = vunpack.c.l.s8.bf16 %v467_v57  ;;  %v1227_v61 = vld [vmem:[%s3596_s27 + $0xf0] sm:$0xff]  ;;  %v1228_v62 = vld [vmem:[%s3596_s27 + $0xf8] sm:$0xff]  ;;  %v511_v1 = vunpack.c.h.s8.bf16 %v467_v57 }
  0x81   : > { %3019 = vmatpush3.bf16.msra.mxu1 %v3158_v13  ;;  %2649 = vmatpush3.bf16.msra.mxu0 %v3158_v13  ;;  %v545_v13 = vunpack.c.l.s8.bf16 %v485_v9 }
  0x82   : > { %3012 = vmatprep.subr.bf16.mxu1 %v3159_v14  ;;  %2650 = vmatprep.subr.bf16.mxu0 %v3159_v14  ;;  %v469_v14 = vld [vmem:[%s3581_s18 + $0x68] sm:$0xff] }
  0x83   : > { %1251 = vperm.xlu0 %3145, %v1201_v6   ;;  %1256 = vperm.xlu1 %3146, %v1202_v7   ;;  %v517_v28 = vunpack.c.h.s8.bf16 %v469_v14 }
  0x85   : > { %3020 = vmatpush3.bf16.msra.mxu1 %v3160_v15  ;;  %2651 = vmatpush3.bf16.msra.mxu0 %v3160_v15  ;;  %v508_v15 = vunpack.c.h.s8.bf16 %v464_v4 }
  0x86   : > { %3013 = vmatprep.subr.bf16.mxu1 %v3161_v16  ;;  %2652 = vmatprep.subr.bf16.mxu0 %v3161_v16  ;;  %v1205_v16 = vld [vmem:[%s3596_s27 + $0x40] sm:$0xff] }
  0x87   : > { %1261 = vperm.xlu0 %3145, %v1203_v10   ;;  %1266 = vperm.xlu1 %3146, %v1204_v11   ;;  %v474_v11 = vld [vmem:[%s3581_s18 + $0x90] sm:$0xff] }
  0x89   : > { %3021 = vmatpush3.bf16.msra.mxu1 %v3162_v17  ;;  %2653 = vmatpush3.bf16.msra.mxu0 %v3162_v17  ;;  %v1206_v17 = vld [vmem:[%s3596_s27 + $0x48] sm:$0xff] }
  0x8a   : > { %2750 = vmatprep.subr.bf16.mxu1 %v3163_v19  ;;  %v513_v19 = vunpack.c.l.s8.bf16 %v469_v14  ;;  %v479_v14 = vld [vmem:[%s3581_s18 + $0xb8] sm:$0xff] }
  0x8b   : > { %1271 = vperm.xlu0 %3145, %v1205_v16   ;;  %1276 = vperm.xlu1 %3146, %v1206_v17   ;;  %v531_v16 = vunpack.c.l.s8.bf16 %v479_v14  ;;  %v3179_v17 = vld [vmem:[#allocation8] sm:$0xff]  }
  0x8c   : > { %873 = vmatmul.mubr.bf16.vlgmr.msra.gmra.mrb[0].mxu1 %v520_v20  ;;  %809 = vmatmul.mubr.bf16.vlgmr.msra.gmra.mrb[0].mxu0 %v488_v31  ;;  %v1207_v20 = vld [vmem:[%s3596_s27 + $0x50] sm:$0xff]  ;;  %v1212_v31 = vld [vmem:[%s3596_s27 + $0x78] sm:$0xff] }
  0x8d   : > { %2751 = vmatpush3.bf16.msra.mxu1 %v3164_v22  ;;  %880 = vmatprep.mubr.bf16.mxu1 %v525_v21  ;;  %v1208_v21 = vld [vmem:[%s3596_s27 + $0x58] sm:$0xff]  ;;  %v544_v22 = vunpack.c.l.s8.bf16 %v484_v18 }
  0x8e   : > { %2752 = vmatprep.subr.bf16.mxu1 %v3165_v23  ;;  %816 = vmatprep.mubr.bf16.mxu0 %v493_v27  ;;  %v549_v23 = vunpack.c.h.s8.bf16 %v485_v9  ;;  %v1210_v27 = vld [vmem:[%s3596_s27 + $0x68] sm:$0xff] }
  0x8f   : > { %1281 = vperm.xlu0 %3145, %v1207_v20   ;;  %1286 = vperm.xlu1 %3146, %v1208_v21   ;;  %v535_v21 = vunpack.c.h.s8.bf16 %v479_v14 }
  0x90   : > { %2910 = vmatprep.subr.bf16.mxu0 %v3179_v17 }
  0x91   : > { %2753 = vmatpush3.bf16.msra.mxu1 %v3166_v25  ;;  %v512_v25 = vunpack.c.l.s8.bf16 %v468_v24  ;;  %2911 = vmatpush3.bf16.msra.mxu0 %v3179_v17 }
  0x92   : > { %2754 = vmatprep.subr.bf16.mxu1 %v3167_v30  ;;  %v1211_v30 = vld [vmem:[%s3596_s27 + $0x70] sm:$0xff] }
  0x93   : > { %1291 = vperm.xlu0 %3145, %v1209_v26   ;;  %1296 = vperm.xlu1 %3146, %v1210_v27   ;;  %v3183_v27 = vld [vmem:[#allocation8 + $0x20] sm:$0xff]  }
  0x94   : > { %881 = vmatmul.mubr.bf16.gmra.mrb[4].mxu1 %v524_v32  ;;  %817 = vmatmul.mubr.bf16.gmra.mrb[4].mxu0 %v492_v39  ;;  %v548_v32 = vunpack.c.h.s8.bf16 %v484_v18  ;;  %v1216_v39 = vld [vmem:[%s3596_s27 + $0x98] sm:$0xff]  ;;  %v478_v18 = vld [vmem:[%s3581_s18 + $0xb0] sm:$0xff] }
  0x95   : > { %888 = vmatprep.mubr.bf16.mxu1 %v529_v33  ;;  %2755 = vmatpush3.bf16.msra.mxu1 %v3168_v34  ;;  %v491_v33 = vunpack.c.l.s8.bf16 %v459_v29  ;;  %v516_v34 = vunpack.c.h.s8.bf16 %v468_v24  ;;  %v530_v20 = vunpack.c.l.s8.bf16 %v478_v18  ;;  %v483_v24 = vld [vmem:[%s3581_s18 + $0xd8] sm:$0xff] }
  0x96   : > { %2756 = vmatprep.subr.bf16.mxu1 %v3169_v35  ;;  %824 = vmatprep.mubr.bf16.mxu0 %v497_v41  ;;  %v1213_v35 = vld [vmem:[%s3596_s27 + $0x80] sm:$0xff]  ;;  %v495_v41 = vunpack.c.h.s8.bf16 %v459_v29  ;;  %v539_v26 = vunpack.c.l.s8.bf16 %v483_v24  ;;  %v3184_v29 = vld [vmem:[#allocation8 + $0x28] sm:$0xff]  }
  0x97   : > { %1301 = vperm.xlu0 %3145, %v1211_v30   ;;  %1306 = vperm.xlu1 %3146, %v1212_v31   ;;  %v543_v31 = vunpack.c.h.s8.bf16 %v483_v24 }
  0x99   : > { %2757 = vmatpush3.bf16.msra.mxu1 %v3170_v38  ;;  %v1215_v38 = vld [vmem:[%s3596_s27 + $0x90] sm:$0xff] }
  0x9a   : > { %2758 = vmatprep.subr.bf16.mxu1 %v3171_v40  ;;  %v490_v40 = vunpack.c.l.s8.bf16 %v458_v37 }
  0x9b   : > { %1311 = vperm.xlu0 %3145, %v1213_v35   ;;  %1316 = vperm.xlu1 %3146, %v1214_v36  }
  0x9c   : > { %889 = vmatmul.mubr.bf16.gmra.mrb[8].mxu1 %v528_v44  ;;  %825 = vmatmul.mubr.bf16.gmra.mrb[8].mxu0 %v496_v49  ;;  %v463_v44 = vld [vmem:[%s3581_s18 + $0x38] sm:$0xff]  ;;  %v1221_v49 = vld [vmem:[%s3596_s27 + $0xc0] sm:$0xff] }
  0x9d   : > { %896 = vmatprep.mubr.bf16.mxu1 %v533_v46  ;;  %2759 = vmatpush3.bf16.msra.mxu1 %v3172_v42  ;;  %v1217_v42 = vld [vmem:[%s3596_s27 + $0xa0] sm:$0xff]  ;;  %v1220_v46 = vld [vmem:[%s3596_s27 + $0xb8] sm:$0xff]  ;;  %v499_v48 = vunpack.c.l.s8.bf16 %v463_v44 }
  0x9e   : > { %2760 = vmatprep.subr.bf16.mxu1 %v3173_v45  ;;  %832 = vmatprep.mubr.bf16.mxu0 %v501_v50  ;;  %v1219_v45 = vld [vmem:[%s3596_s27 + $0xb0] sm:$0xff]  ;;  %v1222_v50 = vld [vmem:[%s3596_s27 + $0xc8] sm:$0xff] }
  0x9f   : > { %1321 = vperm.xlu0 %3145, %v1215_v38   ;;  %1326 = vperm.xlu1 %3146, %v1216_v39  }
  0xa1   : > { %2761 = vmatpush3.bf16.msra.mxu1 %v3174_v47  ;;  %v494_v47 = vunpack.c.h.s8.bf16 %v458_v37  ;;  %v486_v37 = vld [vmem:[%s3581_s18 + $0xf0] sm:$0xff] }
  0xa2   : > { %2762 = vmatprep.subr.bf16.mxu1 %v3175_v51  ;;  %v462_v51 = vld [vmem:[%s3581_s18 + $0x30] sm:$0xff]  ;;  %v546_v38 = vunpack.c.l.s8.bf16 %v486_v37 }
  0xa3   : > { %1331 = vperm.xlu0 %3145, %v1217_v42   ;;  %1336 = vperm.xlu1 %3146, %v1218_v43  }
  0xa4   : > { %897 = vmatmul.mubr.bf16.gmra.mrb[12].mxu1 %v532_v53  ;;  %833 = vmatmul.mubr.bf16.gmra.mrb[12].mxu0 %v500_v59  ;;  %v1224_v53 = vld [vmem:[%s3596_s27 + $0xd8] sm:$0xff]  ;;  %v502_v59 = vunpack.c.h.s8.bf16 %v462_v51 }
  0xa5   : > { %904 = vmatprep.mubr.bf16.mxu1 %v537_v54  ;;  %2763 = vmatpush3.bf16.msra.mxu1 %v3176_v55  ;;  %v498_v54 = vunpack.c.l.s8.bf16 %v462_v51  ;;  %v503_v55 = vunpack.c.h.s8.bf16 %v463_v44 }
  0xa6   : > { %2764 = vmatprep.subr.bf16.mxu1 %v3177_v56  ;;  %840 = vmatprep.mubr.bf16.mxu0 %v505_v0  ;;  %v1225_v56 = vld [vmem:[%s3596_s27 + $0xe0] sm:$0xff]  ;;  %s3301_s27 = scalar_lea.vmem %s3300_s14, 4096 }
  0xa7   : > { %1341 = vperm.xlu0 %3145, %v1219_v45   ;;  %1346 = vperm.xlu1 %3146, %v1220_v46   ;;  %p3303_p5 = scmp.lt.s32.totalorder %s3301_s27, %s3295_s29 }
  0xa9   : > { %2765 = vmatpush3.bf16.msra.mxu1 %v3178_v63  ;;  %v466_v63 = vld [vmem:[%s3581_s18 + $0x50] sm:$0xff]  ;;  %p3304_p6 = por %p3303_p5, %p3302_p3 }
  0xaa   : > { %v506_v0 = vunpack.c.l.s8.bf16 %v466_v63 }
  0xab   : > { %1351 = vperm.xlu0 %3145, %v1221_v49   ;;  %1356 = vperm.xlu1 %3146, %v1222_v50   ;;  %p3305_p7 = pnand %p3304_p6, %p3298_p2 }
  0xac   : > { %905 = vmatmul.mubr.bf16.gmra.mrb[16].mxu1 %v536_v2  ;;  %841 = vmatmul.mubr.bf16.gmra.mrb[16].mxu0 %v504_v5  ;;  %v471_v2 = vld [vmem:[%s3581_s18 + $0x78] sm:$0xff]  ;;  %v470_v5 = vld [vmem:[%s3581_s18 + $0x70] sm:$0xff] }
  0xad   : > { %912 = vmatprep.mubr.bf16.mxu1 %v541_v3  ;;  %848 = vmatprep.mubr.bf16.mxu0 %v509_v8  ;;  %v510_v3 = vunpack.c.h.s8.bf16 %v466_v63  ;;  %v515_v4 = vunpack.c.l.s8.bf16 %v471_v2  ;;  %v514_v6 = vunpack.c.l.s8.bf16 %v470_v5  ;;  %v519_v7 = vunpack.c.h.s8.bf16 %v471_v2  ;;  %v475_v8 = vld [vmem:[%s3581_s18 + $0x98] sm:$0xff]  ;;  %v3669_v2 = vld [vmem:[#allocation6] sm:$0xff]  }
  0xae   : > { %v518_v9 = vunpack.c.h.s8.bf16 %v470_v5  ;;  %v523_v10 = vunpack.c.l.s8.bf16 %v475_v8 }
  0xaf   : > { %1361 = vperm.xlu0 %3145, %v1223_v52   ;;  %1366 = vperm.xlu1 %3146, %v1224_v53  }
  0xb3   : > { %1371 = vperm.xlu0 %3145, %v1225_v56   ;;  %1376 = vperm.xlu1 %3146, %v1226_v58  }
  0xb4   : > { %913 = vmatmul.mubr.bf16.gmra.mrb[20].mxu1 %v540_v12  ;;  %849 = vmatmul.mubr.bf16.gmra.mrb[20].mxu0 %v508_v15  ;;  %v522_v12 = vunpack.c.l.s8.bf16 %v474_v11  ;;  %v526_v15 = vunpack.c.h.s8.bf16 %v474_v11 }
  0xb5   : > { %920 = vmatprep.mubr.bf16.mxu1 %v545_v13  ;;  %856 = vmatprep.mubr.bf16.mxu0 %v513_v19  ;;  %v527_v13 = vunpack.c.h.s8.bf16 %v475_v8  ;;  %v3180_v19 = vld [vmem:[#allocation8 + $0x8] sm:$0xff]  }
  0xb6   : > { %2912 = vmatprep.subr.bf16.mxu0 %v3180_v19 }
  0xb7   : > { %1381 = vperm.xlu0 %3145, %v1227_v61   ;;  %1386 = vperm.xlu1 %3146, %v1228_v62  }
  0xb8   : > { %2913 = vmatpush3.bf16.msra.mxu0 %v3180_v19 }
  0xbc   : > { %921 = vmatmul.mubr.bf16.gmra.mrb[24].mxu1 %v544_v22  ;;  %857 = vmatmul.mubr.bf16.gmra.mrb[24].mxu0 %v512_v25  ;;  %v3181_v22 = vld [vmem:[#allocation8 + $0x10] sm:$0xff]   ;;  %v534_v25 = vunpack.c.h.s8.bf16 %v478_v18 }
  0xbd   : > { %928 = vmatprep.mubr.bf16.mxu1 %v549_v23  ;;  %864 = vmatprep.mubr.bf16.mxu0 %v517_v28  ;;  %v3182_v23 = vld [vmem:[#allocation8 + $0x18] sm:$0xff]   ;;  %v482_v28 = vld [vmem:[%s3581_s18 + $0xd0] sm:$0xff] }
  0xbe   : > { %2914 = vmatprep.subr.bf16.mxu0 %v3181_v22  ;;  %v538_v30 = vunpack.c.l.s8.bf16 %v482_v28  ;;  %v542_v35 = vunpack.c.h.s8.bf16 %v482_v28 }
  0xbf   : > { %2915 = vmatpush3.bf16.msra.mxu0 %v3181_v22 }
  0xc0   : > { %2916 = vmatprep.subr.bf16.mxu0 %v3182_v23 }
  0xc3   : > { %2917 = vmatpush3.bf16.msra.mxu0 %v3182_v23 }
  0xc4   : > { %929 = vmatmul.mubr.bf16.gmra.mrb[28].mxu1 %v548_v32  ;;  %865 = vmatmul.mubr.bf16.gmra.mrb[28].mxu0 %v516_v34  ;;  %v3185_v32 = vld [vmem:[#allocation8 + $0x30] sm:$0xff]   ;;  %v487_v34 = vld [vmem:[%s3581_s18 + $0xf8] sm:$0xff] }
  0xc5   : > { %969 = vmatprep.mubr.bf16.mxu1 %v491_v33  ;;  %2918 = vmatprep.subr.bf16.mxu0 %v3183_v27  ;;  %v3186_v33 = vld [vmem:[#allocation8 + $0x38] sm:$0xff]   ;;  %v547_v36 = vunpack.c.l.s8.bf16 %v487_v34  ;;  %v551_v39 = vunpack.c.h.s8.bf16 %v487_v34 }
  0xc7   : > { %2919 = vmatpush3.bf16.msra.mxu0 %v3183_v27 }
  0xc8   : > { %2920 = vmatprep.subr.bf16.mxu0 %v3184_v29 }
  0xcb   : > { %2921 = vmatpush3.bf16.msra.mxu0 %v3184_v29 }
  0xcc   : > { %970 = vmatmul.mubr.bf16.vlgmr.msra.gmra.mrb[32].mxu1 %v490_v40  ;;  %2922 = vmatprep.subr.bf16.mxu0 %v3185_v32  ;;  %v550_v40 = vunpack.c.h.s8.bf16 %v486_v37 }
  0xcd   : > { %977 = vmatprep.mubr.bf16.mxu1 %v495_v41 }
  0xcf   : > { %2923 = vmatpush3.bf16.msra.mxu0 %v3185_v32 }
  0xd0   : > { %2924 = vmatprep.subr.bf16.mxu0 %v3186_v33 }
  0xd3   : > { %2925 = vmatpush3.bf16.msra.mxu0 %v3186_v33 }
  0xd4   : > { %978 = vmatmul.mubr.bf16.gmra.mrb[36].mxu1 %v494_v47  ;;  %2958 = vmatprep.subr.bf16.mxu0 %v3669_v2 }
  0xd5   : > { %985 = vmatprep.mubr.bf16.mxu1 %v499_v48 }
  0xdc   : > { %986 = vmatmul.mubr.bf16.gmra.mrb[40].mxu1 %v498_v54 }
  0xdd   : > { %993 = vmatprep.mubr.bf16.mxu1 %v503_v55 }
  0xe4   : > { %994 = vmatmul.mubr.bf16.gmra.mrb[44].mxu1 %v502_v59 }
  0xe5   : > { %1001 = vmatprep.mubr.bf16.mxu1 %v507_v60 }
  0xec   : > { %1002 = vmatmul.mubr.bf16.gmra.mrb[48].mxu1 %v506_v0 }
  0xed   : > { %1009 = vmatprep.mubr.bf16.mxu1 %v511_v1 }
  0xf4   : > { %1010 = vmatmul.mubr.bf16.gmra.mrb[52].mxu1 %v510_v3 }
  0xf5   : > { %1017 = vmatprep.mubr.bf16.mxu1 %v515_v4 }
  0xfc   : > { %1018 = vmatmul.mubr.bf16.gmra.mrb[56].mxu1 %v514_v6 }
  0xfd   : > { %1025 = vmatprep.mubr.bf16.mxu1 %v519_v7 }
 0x104   : > { %1026 = vmatmul.mubr.bf16.gmra.mrb[60].mxu1 %v518_v9 }
 0x105   : > { %1033 = vmatprep.mubr.bf16.mxu1 %v523_v10 }
 0x10c   : > { %1034 = vmatmul.mubr.bf16.gmra.mrb[64].mxu1 %v522_v12 }
 0x10d   : > { %1041 = vmatprep.mubr.bf16.mxu1 %v527_v13 }
 0x114   : > { %1042 = vmatmul.mubr.bf16.gmra.mrb[68].mxu1 %v526_v15 }
 0x115   : > { %1049 = vmatprep.mubr.bf16.mxu1 %v531_v16 }
 0x11c   : > { %1050 = vmatmul.mubr.bf16.gmra.mrb[72].mxu1 %v530_v20 }
 0x11d   : > { %1057 = vmatprep.mubr.bf16.mxu1 %v535_v21 }
 0x124   : > { %1058 = vmatmul.mubr.bf16.gmra.mrb[76].mxu1 %v534_v25 }
 0x125   : > { %1065 = vmatprep.mubr.bf16.mxu1 %v539_v26 }
 0x12c   : > { %1066 = vmatmul.mubr.bf16.gmra.mrb[80].mxu1 %v538_v30 }
 0x12d   : > { %1073 = vmatprep.mubr.bf16.mxu1 %v543_v31 }
 0x134   : > { %1074 = vmatmul.mubr.bf16.gmra.mrb[84].mxu1 %v542_v35 }
 0x135   : > { %1081 = vmatprep.mubr.bf16.mxu1 %v547_v36 }
 0x13c   : > { %1082 = vmatmul.mubr.bf16.gmra.mrb[88].mxu1 %v546_v38 }
 0x13d   : > { %1089 = vmatprep.mubr.bf16.mxu1 %v551_v39 }
 0x144   : > { %1090 = vmatmul.mubr.bf16.gmra.mrb[92].mxu1 %v550_v40 }
 0x15f   : > { %v2702_v41 = vpop.f32.mrb[0].mxu1  ;;  %v2654_v47 = vpop.f32.mrb[0].mxu0 }
 0x160   : > { %v2703_v42 = vpop.f32.mrb[1].mxu1  ;;  %v2655_v48 = vpop.f32.mrb[1].mxu0 }
 0x161   : > { %v3653_v43 = vadd.f32 %v2703_v42, %v2702_v41  ;;  %v2705_v44 = vpop.f32.mrb[2].mxu1  ;;  %v3657_v49 = vadd.f32 %v2655_v48, %v2654_v47  ;;  %v2657_v50 = vpop.f32.mrb[2].mxu0 }
 0x162   : > { %v2706_v45 = vpop.f32.mrb[3].mxu1  ;;  %v2658_v51 = vpop.f32.mrb[3].mxu0 }
 0x163   : > { %v3655_v46 = vadd.f32 %v2706_v45, %v2705_v44  ;;  %v3659_v53 = vadd.f32 %v2658_v51, %v2657_v50 }
 0x167   : > { %v2708_v52 = vpop.f32.mrb[4].mxu1  ;;  %v2660_v59 = vpop.f32.mrb[4].mxu0 }
 0x168   : > { %v2709_v54 = vpop.f32.mrb[5].mxu1  ;;  %v2661_v60 = vpop.f32.mrb[5].mxu0 }
 0x169   : > { %v3661_v55 = vadd.f32 %v2709_v54, %v2708_v52  ;;  %v2711_v56 = vpop.f32.mrb[6].mxu1  ;;  %v3665_v61 = vadd.f32 %v2661_v60, %v2660_v59  ;;  %v2663_v62 = vpop.f32.mrb[6].mxu0 }
 0x16a   : > { %v2712_v57 = vpop.f32.mrb[7].mxu1  ;;  %v2664_v63 = vpop.f32.mrb[7].mxu0 }
 0x16b   : > { %v3663_v58 = vadd.f32 %v2712_v57, %v2711_v56  ;;  %v3667_v1 = vadd.f32 %v2664_v63, %v2663_v62 }
 0x16f   : > { %v2714_v0 = vpop.f32.mrb[8].mxu1  ;;  %v2666_v8 = vpop.f32.mrb[8].mxu0 }
 0x170   : > { %v2715_v3 = vpop.f32.mrb[9].mxu1  ;;  %v2667_v9 = vpop.f32.mrb[9].mxu0 }
 0x171   : > { %v3671_v4 = vadd.f32 %v2715_v3, %v2714_v0  ;;  %v2717_v5 = vpop.f32.mrb[10].mxu1  ;;  %v3676_v10 = vadd.f32 %v2667_v9, %v2666_v8  ;;  %v2669_v11 = vpop.f32.mrb[10].mxu0 }
 0x172   : > { %v2718_v6 = vpop.f32.mrb[11].mxu1  ;;  %v2670_v12 = vpop.f32.mrb[11].mxu0 }
 0x173   : > { %v3674_v7 = vadd.f32 %v2718_v6, %v2717_v5  ;;  %v3678_v14 = vadd.f32 %v2670_v12, %v2669_v11 }
 0x177   : > { %v2720_v13 = vpop.f32.mrb[12].mxu1  ;;  %v2672_v20 = vpop.f32.mrb[12].mxu0 }
 0x178   : > { %v2721_v15 = vpop.f32.mrb[13].mxu1  ;;  %v2673_v21 = vpop.f32.mrb[13].mxu0 }
 0x179   : > { %v3680_v16 = vadd.f32 %v2721_v15, %v2720_v13  ;;  %v2723_v17 = vpop.f32.mrb[14].mxu1  ;;  %v3684_v22 = vadd.f32 %v2673_v21, %v2672_v20  ;;  %v2675_v23 = vpop.f32.mrb[14].mxu0 }
 0x17a   : > { %v2724_v18 = vpop.f32.mrb[15].mxu1  ;;  %v2676_v24 = vpop.f32.mrb[15].mxu0 }
 0x17b   : > { %v3682_v19 = vadd.f32 %v2724_v18, %v2723_v17  ;;  %v3686_v26 = vadd.f32 %v2676_v24, %v2675_v23  ;;  %v1232_v24 = vpop.permute.xlu0 %1231 }
 0x17f   : > { %v2726_v25 = vpop.f32.mrb[16].mxu1  ;;  %v2678_v32 = vpop.f32.mrb[16].mxu0 }
 0x180   : > { %v2727_v27 = vpop.f32.mrb[17].mxu1  ;;  %v2679_v33 = vpop.f32.mrb[17].mxu0 }
 0x181   : > { %v3688_v28 = vadd.f32 %v2727_v27, %v2726_v25  ;;  %v2729_v29 = vpop.f32.mrb[18].mxu1  ;;  %v3692_v34 = vadd.f32 %v2679_v33, %v2678_v32  ;;  %v2681_v35 = vpop.f32.mrb[18].mxu0 }
 0x182   : > { %v2730_v30 = vpop.f32.mrb[19].mxu1  ;;  %v2682_v36 = vpop.f32.mrb[19].mxu0 }
 0x183   : > { %v3690_v31 = vadd.f32 %v2730_v30, %v2729_v29  ;;  %v3694_v38 = vadd.f32 %v2682_v36, %v2681_v35 }
 0x187   : > { %v2732_v37 = vpop.f32.mrb[20].mxu1  ;;  %v2684_v45 = vpop.f32.mrb[20].mxu0 }
 0x188   : > { %v2733_v39 = vpop.f32.mrb[21].mxu1  ;;  %v2685_v47 = vpop.f32.mrb[21].mxu0 }
 0x189   : > { %v3696_v40 = vadd.f32 %v2733_v39, %v2732_v37  ;;  %v2735_v41 = vpop.f32.mrb[22].mxu1  ;;  %v3700_v48 = vadd.f32 %v2685_v47, %v2684_v45  ;;  %v2687_v50 = vpop.f32.mrb[22].mxu0 }
 0x18a   : > { %v2736_v42 = vpop.f32.mrb[23].mxu1  ;;  %v2688_v51 = vpop.f32.mrb[23].mxu0 }
 0x18b   : > { %v3698_v44 = vadd.f32 %v2736_v42, %v2735_v41  ;;  %v3702_v54 = vadd.f32 %v2688_v51, %v2687_v50  ;;  %v1237_v39 = vpop.permute.xlu0 %1236  ;;  %v1242_v50 = vpop.permute.xlu1 %1241 }
 0x18f   : > { %v2738_v52 = vpop.f32.mrb[24].mxu1  ;;  %v2690_v63 = vpop.f32.mrb[24].mxu0 }
 0x190   : > { %v2739_v56 = vpop.f32.mrb[25].mxu1  ;;  %v2691_v0 = vpop.f32.mrb[25].mxu0 }
 0x191   : > { %v3704_v57 = vadd.f32 %v2739_v56, %v2738_v52  ;;  %v2741_v59 = vpop.f32.mrb[26].mxu1  ;;  %v3708_v3 = vadd.f32 %v2691_v0, %v2690_v63  ;;  %v2693_v5 = vpop.f32.mrb[26].mxu0 }
 0x192   : > { %v2742_v60 = vpop.f32.mrb[27].mxu1  ;;  %v2694_v6 = vpop.f32.mrb[27].mxu0 }
 0x193   : > { %v3706_v62 = vadd.f32 %v2742_v60, %v2741_v59  ;;  %v3710_v9 = vadd.f32 %v2694_v6, %v2693_v5  ;;  %v1247_v5 = vpop.permute.xlu1 %1246 }
 0x197   : > { %v2744_v8 = vpop.f32.mrb[28].mxu1  ;;  %v2696_v18 = vpop.f32.mrb[28].mxu0 }
 0x198   : > { %v2745_v11 = vpop.f32.mrb[29].mxu1  ;;  %v2697_v20 = vpop.f32.mrb[29].mxu0 }
 0x199   : > { %v3712_v12 = vadd.f32 %v2745_v11, %v2744_v8  ;;  %v2747_v13 = vpop.f32.mrb[30].mxu1  ;;  %v3716_v21 = vadd.f32 %v2697_v20, %v2696_v18  ;;  %v2699_v23 = vpop.f32.mrb[30].mxu0  ;;  %v3188_v20 = vld [vmem:[#allocation6 + $0x8] sm:$0xff]  }
 0x19a   : > { %v2748_v15 = vpop.f32.mrb[31].mxu1  ;;  %v2700_v25 = vpop.f32.mrb[31].mxu0 }
 0x19b   : > { %v3714_v17 = vadd.f32 %v2748_v15, %v2747_v13  ;;  %v3718_v29 = vadd.f32 %v2700_v25, %v2699_v23 }
 0x19f   : > { %v2766_v27 = vpop.f32.mrb[32].mxu1 }
 0x1a0   : > { %v2767_v30 = vpop.f32.mrb[33].mxu1 }
 0x1a1   : > { %v2768_v32 = vadd.f32 %v2767_v30, %v2766_v27  ;;  %v2769_v33 = vpop.f32.mrb[34].mxu1  ;;  %v1252_v27 = vpop.permute.xlu0 %1251 }
 0x1a2   : > { %v2770_v35 = vpop.f32.mrb[35].mxu1  ;;  %v1257_v30 = vpop.permute.xlu1 %1256 }
 0x1a3   : > { %v972_v36 = vadd.f32 %v2768_v32, %v3657_v49  ;;  %v2771_v37 = vadd.f32 %v2770_v35, %v2769_v33 }
 0x1a5   : > { %v975_v41 = vadd.f32 %v2771_v37, %v3659_v53  ;;  %v1389_v42 = vmul.f32 %v1232_v24, %v972_v36 }
 0x1a7   : > { %v1390_v45 = vmul.f32 %v1237_v39, %v975_v41  ;;  %v2772_v47 = vpop.f32.mrb[36].mxu1 }
 0x1a8   : > { %v2773_v51 = vpop.f32.mrb[37].mxu1 }
 0x1a9   : > { %v1421_v52 = vpack.c.bf16 %v1390_v45, %v1389_v42  ;;  %v2774_v56 = vadd.f32 %v2773_v51, %v2772_v47  ;;  %v2775_v59 = vpop.f32.mrb[38].mxu1  ;;  %v3191_v47 = vld [vmem:[#allocation6 + $0x20] sm:$0xff]   ;;  %v1267_v51 = vpop.permute.xlu1 %1266 }
 0x1aa   : > { %v2776_v60 = vpop.f32.mrb[39].mxu1 }
 0x1ab   : > { %v980_v49 = vadd.f32 %v2774_v56, %v3665_v61  ;;  %v2777_v63 = vadd.f32 %v2776_v60, %v2775_v59  ;;  %2926 = vmatprep.mubr.bf16.mxu0 %v1421_v52 }
 0x1ad   : > { %v983_v0 = vadd.f32 %v2777_v63, %v3667_v1  ;;  %v1391_v53 = vmul.f32 %v1242_v50, %v980_v49  ;;  %v3189_v1 = vld [vmem:[#allocation6 + $0x10] sm:$0xff]   ;;  %v1262_v50 = vpop.permute.xlu0 %1261 }
 0x1af   : > { %v1392_v6 = vmul.f32 %v1247_v5, %v983_v0  ;;  %v2778_v8 = vpop.f32.mrb[40].mxu1  ;;  %v3192_v5 = vld [vmem:[#allocation6 + $0x28] sm:$0xff]  }
 0x1b0   : > { %v2779_v11 = vpop.f32.mrb[41].mxu1 }
 0x1b1   : > { %v1422_v13 = vpack.c.bf16 %v1392_v6, %v1391_v53  ;;  %v2780_v15 = vadd.f32 %v2779_v11, %v2778_v8  ;;  %v2781_v18 = vpop.f32.mrb[42].mxu1  ;;  %v3193_v8 = vld [vmem:[#allocation6 + $0x30] sm:$0xff]   ;;  %v1272_v11 = vpop.permute.xlu0 %1271 }
 0x1b2   : > { %v2782_v23 = vpop.f32.mrb[43].mxu1 }
 0x1b3   : > { %v988_v24 = vadd.f32 %v2780_v15, %v3676_v10  ;;  %v2783_v25 = vadd.f32 %v2782_v23, %v2781_v18  ;;  %2927 = vmatmul.mubr.bf16.vlgmr.msra.gmra.mrb[32].mxu0 %v1422_v13  ;;  %v3190_v10 = vld [vmem:[#allocation6 + $0x18] sm:$0xff]   ;;  %v1277_v13 = vpop.permute.xlu1 %1276 }
 0x1b4   : > { %2959 = vmatpush3.bf16.msra.mxu0 %v3669_v2 }
 0x1b5   : > { %v991_v61 = vadd.f32 %v2783_v25, %v3678_v14  ;;  %2960 = vmatprep.subr.bf16.mxu0 %v3188_v20  ;;  %v1393_v32 = vmul.f32 %v1252_v27, %v988_v24 }
 0x1b7   : > { %v1394_v33 = vmul.f32 %v1257_v30, %v991_v61  ;;  %v2784_v35 = vpop.f32.mrb[44].mxu1 }
 0x1b8   : > { %v2785_v36 = vpop.f32.mrb[45].mxu1  ;;  %2961 = vmatpush3.bf16.msra.mxu0 %v3188_v20 }
 0x1b9   : > { %v2786_v37 = vadd.f32 %v2785_v36, %v2784_v35  ;;  %v2787_v39 = vpop.f32.mrb[46].mxu1  ;;  %v1423_v41 = vpack.c.bf16 %v1394_v33, %v1393_v32  ;;  %2962 = vmatprep.subr.bf16.mxu0 %v3189_v1  ;;  %v1282_v32 = vpop.permute.xlu0 %1281 }
 0x1ba   : > { %v2788_v42 = vpop.f32.mrb[47].mxu1  ;;  %v1287_v33 = vpop.permute.xlu1 %1286 }
 0x1bb   : > { %v996_v45 = vadd.f32 %v2786_v37, %v3684_v22  ;;  %v2789_v2 = vadd.f32 %v2788_v42, %v2787_v39  ;;  %2930 = vmatprep.mubr.bf16.mxu0 %v1423_v41 }
 0x1bc   : > { %2963 = vmatpush3.bf16.msra.mxu0 %v3189_v1  ;;  %v3194_v1 = vld [vmem:[#allocation6 + $0x38] sm:$0xff]  }
 0x1bd   : > { %v999_v14 = vadd.f32 %v2789_v2, %v3686_v26  ;;  %2964 = vmatprep.subr.bf16.mxu0 %v3190_v10  ;;  %v1395_v52 = vmul.f32 %v1262_v50, %v996_v45 }
 0x1bf   : > { %v1396_v56 = vmul.f32 %v1267_v51, %v999_v14  ;;  %v2790_v59 = vpop.f32.mrb[48].mxu1 }
 0x1c0   : > { %v2791_v60 = vpop.f32.mrb[49].mxu1  ;;  %2965 = vmatpush3.bf16.msra.mxu0 %v3190_v10 }
 0x1c1   : > { %v2792_v49 = vadd.f32 %v2791_v60, %v2790_v59  ;;  %v2793_v63 = vpop.f32.mrb[50].mxu1  ;;  %v1424_v0 = vpack.c.bf16 %v1396_v56, %v1395_v52  ;;  %2966 = vmatprep.subr.bf16.mxu0 %v3191_v47 }
 0x1c2   : > { %v2794_v22 = vpop.f32.mrb[51].mxu1 }
 0x1c3   : > { %v1004_v53 = vadd.f32 %v2792_v49, %v3692_v34  ;;  %v2795_v6 = vadd.f32 %v2794_v22, %v2793_v63  ;;  %2931 = vmatmul.mubr.bf16.gmra.mrb[36].mxu0 %v1424_v0 }
 0x1c4   : > { %2967 = vmatpush3.bf16.msra.mxu0 %v3191_v47  ;;  %v1292_v47 = vpop.permute.xlu0 %1291 }
 0x1c5   : > { %v1007_v26 = vadd.f32 %v2795_v6, %v3694_v38  ;;  %2968 = vmatprep.subr.bf16.mxu0 %v3192_v5  ;;  %v1397_v15 = vmul.f32 %v1272_v11, %v1004_v53 }
 0x1c7   : > { %v1398_v18 = vmul.f32 %v1277_v13, %v1007_v26  ;;  %v2796_v20 = vpop.f32.mrb[52].mxu1 }
 0x1c8   : > { %v2797_v23 = vpop.f32.mrb[53].mxu1  ;;  %2969 = vmatpush3.bf16.msra.mxu0 %v3192_v5  ;;  %v1302_v22 = vpop.permute.xlu0 %1301 }
 0x1c9   : > { %v2798_v24 = vadd.f32 %v2797_v23, %v2796_v20  ;;  %v2799_v25 = vpop.f32.mrb[54].mxu1  ;;  %v1425_v61 = vpack.c.bf16 %v1398_v18, %v1397_v15  ;;  %2970 = vmatprep.subr.bf16.mxu0 %v3193_v8 }
 0x1ca   : > { %v2800_v34 = vpop.f32.mrb[55].mxu1 }
 0x1cb   : > { %v1012_v27 = vadd.f32 %v2798_v24, %v3700_v48  ;;  %v2801_v30 = vadd.f32 %v2800_v34, %v2799_v25  ;;  %2934 = vmatprep.mubr.bf16.mxu0 %v1425_v61 }
 0x1cc   : > { %2971 = vmatpush3.bf16.msra.mxu0 %v3193_v8  ;;  %v1312_v24 = vpop.permute.xlu0 %1311 }
 0x1cd   : > { %v1015_v38 = vadd.f32 %v2801_v30, %v3702_v54  ;;  %2972 = vmatprep.subr.bf16.mxu0 %v3194_v1  ;;  %v1399_v35 = vmul.f32 %v1282_v32, %v1012_v27  ;;  %v1297_v54 = vpop.permute.xlu1 %1296 }
 0x1cf   : > { %v1400_v36 = vmul.f32 %v1287_v33, %v1015_v38  ;;  %v2802_v37 = vpop.f32.mrb[56].mxu1 }
 0x1d0   : > { %v2803_v39 = vpop.f32.mrb[57].mxu1  ;;  %2973 = vmatpush3.bf16.msra.mxu0 %v3194_v1 }
 0x1d1   : > { %v2804_v41 = vadd.f32 %v2803_v39, %v2802_v37  ;;  %v2805_v10 = vpop.f32.mrb[58].mxu1  ;;  %v1426_v42 = vpack.c.bf16 %v1400_v36, %v1399_v35  ;;  %v1307_v53 = vpop.permute.xlu1 %1306 }
 0x1d2   : > { %v2806_v45 = vpop.f32.mrb[59].mxu1  ;;  %v1322_v36 = vpop.permute.xlu0 %1321 }
 0x1d3   : > { %v1020_v2 = vadd.f32 %v2804_v41, %v3708_v3  ;;  %v2807_v48 = vadd.f32 %v2806_v45, %v2805_v10  ;;  %2935 = vmatmul.mubr.bf16.gmra.mrb[40].mxu0 %v1426_v42 }
 0x1d5   : > { %v1023_v14 = vadd.f32 %v2807_v48, %v3710_v9  ;;  %v1401_v50 = vmul.f32 %v1292_v47, %v1020_v2  ;;  %v1317_v25 = vpop.permute.xlu1 %1316 }
 0x1d7   : > { %v1402_v51 = vmul.f32 %v1297_v54, %v1023_v14  ;;  %v2808_v52 = vpop.f32.mrb[60].mxu1  ;;  %v1332_v54 = vpop.permute.xlu0 %1331 }
 0x1d8   : > { %v2809_v56 = vpop.f32.mrb[61].mxu1 }
 0x1d9   : > { %v2810_v59 = vadd.f32 %v2809_v56, %v2808_v52  ;;  %v2811_v60 = vpop.f32.mrb[62].mxu1  ;;  %v1427_v49 = vpack.c.bf16 %v1402_v51, %v1401_v50  ;;  %v1327_v37 = vpop.permute.xlu1 %1326 }
 0x1da   : > { %v2812_v63 = vpop.f32.mrb[63].mxu1 }
 0x1db   : > { %v1028_v0 = vadd.f32 %v2810_v59, %v3716_v21  ;;  %v2813_v5 = vadd.f32 %v2812_v63, %v2811_v60  ;;  %2938 = vmatprep.mubr.bf16.mxu0 %v1427_v49 }
 0x1dd   : > { %v1031_v3 = vadd.f32 %v2813_v5, %v3718_v29  ;;  %v1403_v6 = vmul.f32 %v1302_v22, %v1028_v0  ;;  %v1337_v50 = vpop.permute.xlu1 %1336 }
 0x1df   : > { %v1404_v9 = vmul.f32 %v1307_v53, %v1031_v3  ;;  %v2814_v26 = vpop.f32.mrb[64].mxu1  ;;  %v1342_v3 = vpop.permute.xlu0 %1341 }
 0x1e0   : > { %v2815_v8 = vpop.f32.mrb[65].mxu1 }
 0x1e1   : > { %v2816_v11 = vadd.f32 %v2815_v8, %v2814_v26  ;;  %v2817_v13 = vpop.f32.mrb[66].mxu1  ;;  %v1428_v15 = vpack.c.bf16 %v1404_v9, %v1403_v6  ;;  %v1347_v22 = vpop.permute.xlu1 %1346 }
 0x1e2   : > { %v2818_v18 = vpop.f32.mrb[67].mxu1 }
 0x1e3   : > { %v1036_v20 = vadd.f32 %v2816_v11, %v3653_v43  ;;  %v2819_v23 = vadd.f32 %v2818_v18, %v2817_v13  ;;  %2939 = vmatmul.mubr.bf16.gmra.mrb[44].mxu0 %v1428_v15 }
 0x1e5   : > { %v1039_v21 = vadd.f32 %v2819_v23, %v3655_v46  ;;  %v1405_v61 = vmul.f32 %v1312_v24, %v1036_v20  ;;  %v1352_v20 = vpop.permute.xlu0 %1351  ;;  %v1357_v23 = vpop.permute.xlu1 %1356 }
 0x1e7   : > { %v1406_v29 = vmul.f32 %v1317_v25, %v1039_v21  ;;  %v2820_v1 = vpop.f32.mrb[68].mxu1 }
 0x1e8   : > { %v2821_v34 = vpop.f32.mrb[69].mxu1 }
 0x1e9   : > { %v2822_v27 = vadd.f32 %v2821_v34, %v2820_v1  ;;  %v2823_v30 = vpop.f32.mrb[70].mxu1  ;;  %v1429_v38 = vpack.c.bf16 %v1406_v29, %v1405_v61 }
 0x1ea   : > { %v2824_v32 = vpop.f32.mrb[71].mxu1 }
 0x1eb   : > { %v1044_v33 = vadd.f32 %v2822_v27, %v3661_v55  ;;  %v2825_v35 = vadd.f32 %v2824_v32, %v2823_v30  ;;  %2942 = vmatprep.mubr.bf16.mxu0 %v1429_v38  ;;  %v1362_v38 = vpop.permute.xlu0 %1361  ;;  %v1367_v32 = vpop.permute.xlu1 %1366 }
 0x1ed   : > { %v1047_v43 = vadd.f32 %v2825_v35, %v3663_v58  ;;  %v1407_v39 = vmul.f32 %v1322_v36, %v1044_v33 }
 0x1ef   : > { %v1408_v46 = vmul.f32 %v1327_v37, %v1047_v43  ;;  %v2826_v41 = vpop.f32.mrb[72].mxu1 }
 0x1f0   : > { %v2827_v10 = vpop.f32.mrb[73].mxu1 }
 0x1f1   : > { %v2828_v42 = vadd.f32 %v2827_v10, %v2826_v41  ;;  %v2829_v45 = vpop.f32.mrb[74].mxu1  ;;  %v1430_v2 = vpack.c.bf16 %v1408_v46, %v1407_v39 }
 0x1f2   : > { %v2830_v48 = vpop.f32.mrb[75].mxu1 }
 0x1f3   : > { %v1052_v14 = vadd.f32 %v2828_v42, %v3671_v4  ;;  %v2831_v47 = vadd.f32 %v2830_v48, %v2829_v45  ;;  %2943 = vmatmul.mubr.bf16.gmra.mrb[48].mxu0 %v1430_v2  ;;  %v1372_v42 = vpop.permute.xlu0 %1371  ;;  %v1377_v45 = vpop.permute.xlu1 %1376 }
 0x1f5   : > { %v1055_v55 = vadd.f32 %v2831_v47, %v3674_v7  ;;  %v1409_v51 = vmul.f32 %v1332_v54, %v1052_v14 }
 0x1f7   : > { %v1410_v58 = vmul.f32 %v1337_v50, %v1055_v55  ;;  %v2832_v52 = vpop.f32.mrb[76].mxu1 }
 0x1f8   : > { %v2833_v56 = vpop.f32.mrb[77].mxu1 }
 0x1f9   : > { %v2834_v59 = vadd.f32 %v2833_v56, %v2832_v52  ;;  %v2835_v60 = vpop.f32.mrb[78].mxu1  ;;  %v1431_v49 = vpack.c.bf16 %v1410_v58, %v1409_v51  ;;  %v1382_v58 = vpop.permute.xlu0 %1381 }
 0x1fa   : > { %v2836_v63 = vpop.f32.mrb[79].mxu1  ;;  %v1387_v52 = vpop.permute.xlu1 %1386 }
 0x1fb   : > { %v1060_v0 = vadd.f32 %v2834_v59, %v3680_v16  ;;  %v2837_v5 = vadd.f32 %v2836_v63, %v2835_v60  ;;  %2946 = vmatprep.mubr.bf16.mxu0 %v1431_v49  ;;  %v3195_v60 = vld [vmem:[%s3723_s16] sm:$0xff]   ;;  %v3196_v63 = vld [vmem:[%s3723_s16 + $0x8] sm:$0xff]  }
 0x1fd   : > { %v1063_v4 = vadd.f32 %v2837_v5, %v3682_v19  ;;  %v1411_v53 = vmul.f32 %v1342_v3, %v1060_v0  ;;  %v3198_v0 = vld [vmem:[%s3723_s16 + $0x18] sm:$0xff]   ;;  %v3200_v5 = vld [vmem:[%s3723_s16 + $0x28] sm:$0xff]  }
 0x1fe   : > { %v3202_v3 = vld [vmem:[%s3723_s16 + $0x38] sm:$0xff]  }
 0x1ff   : > { %v1412_v7 = vmul.f32 %v1347_v22, %v1063_v4  ;;  %v2838_v6 = vpop.f32.mrb[80].mxu1  ;;  %v3201_v4 = vld [vmem:[%s3723_s16 + $0x30] sm:$0xff]   ;;  %v3203_v22 = vld [vmem:[%s3723_s16 + $0x40] sm:$0xff]  }
 0x200   : > { %v2839_v9 = vpop.f32.mrb[81].mxu1 }
 0x201   : > { %v2840_v26 = vadd.f32 %v2839_v9, %v2838_v6  ;;  %v2841_v8 = vpop.f32.mrb[82].mxu1  ;;  %v1432_v11 = vpack.c.bf16 %v1412_v7, %v1411_v53  ;;  %v3204_v53 = vld [vmem:[%s3723_s16 + $0x48] sm:$0xff]   ;;  %v3205_v7 = vld [vmem:[%s3723_s16 + $0x50] sm:$0xff]   ;;  %v3206_v6 = vld [vmem:[%s3723_s16 + $0x58] sm:$0xff]  }
 0x202   : > { %v2842_v13 = vpop.f32.mrb[83].mxu1  ;;  %v3207_v9 = vld [vmem:[%s3723_s16 + $0x60] sm:$0xff]  }
 0x203   : > { %v1068_v15 = vadd.f32 %v2840_v26, %v3688_v28  ;;  %v2843_v18 = vadd.f32 %v2842_v13, %v2841_v8  ;;  %2947 = vmatmul.mubr.bf16.gmra.mrb[52].mxu0 %v1432_v11  ;;  %v3208_v26 = vld [vmem:[%s3723_s16 + $0x68] sm:$0xff]   ;;  %v3209_v8 = vld [vmem:[%s3723_s16 + $0x70] sm:$0xff]   ;;  %v3210_v11 = vld [vmem:[%s3723_s16 + $0x78] sm:$0xff]  }
 0x204   : > { %v3775_v13 = vld [vmem:[%s3892_s5] ss:$0 sm:$0xff] }
 0x205   : > { %v1071_v16 = vadd.f32 %v2843_v18, %v3690_v31  ;;  %v1413_v21 = vmul.f32 %v1352_v20, %v1068_v15 }
 0x207   : > { %v1414_v19 = vmul.f32 %v1357_v23, %v1071_v16  ;;  %v2844_v24 = vpop.f32.mrb[84].mxu1 }
 0x208   : > { %v2845_v25 = vpop.f32.mrb[85].mxu1 }
 0x209   : > { %v2846_v61 = vadd.f32 %v2845_v25, %v2844_v24  ;;  %v2847_v29 = vpop.f32.mrb[86].mxu1  ;;  %v1433_v1 = vpack.c.bf16 %v1414_v19, %v1413_v21 }
 0x20a   : > { %v2848_v34 = vpop.f32.mrb[87].mxu1 }
 0x20b   : > { %v1076_v27 = vadd.f32 %v2846_v61, %v3696_v40  ;;  %v2849_v30 = vadd.f32 %v2848_v34, %v2847_v29  ;;  %2950 = vmatprep.mubr.bf16.mxu0 %v1433_v1 }
 0x20d   : > { %v1079_v28 = vadd.f32 %v2849_v30, %v3698_v44  ;;  %v1415_v33 = vmul.f32 %v1362_v38, %v1076_v27 }
 0x20f   : > { %v1416_v31 = vmul.f32 %v1367_v32, %v1079_v28  ;;  %v2850_v35 = vpop.f32.mrb[88].mxu1 }
 0x210   : > { %v2851_v43 = vpop.f32.mrb[89].mxu1 }
 0x211   : > { %v2852_v36 = vadd.f32 %v2851_v43, %v2850_v35  ;;  %v2853_v37 = vpop.f32.mrb[90].mxu1  ;;  %v1434_v39 = vpack.c.bf16 %v1416_v31, %v1415_v33 }
 0x212   : > { %v2854_v46 = vpop.f32.mrb[91].mxu1 }
 0x213   : > { %v1084_v41 = vadd.f32 %v2852_v36, %v3704_v57  ;;  %v2855_v10 = vadd.f32 %v2854_v46, %v2853_v37  ;;  %2951 = vmatmul.mubr.bf16.gmra.mrb[56].mxu0 %v1434_v39 }
 0x215   : > { %v1087_v40 = vadd.f32 %v2855_v10, %v3706_v62  ;;  %v1417_v2 = vmul.f32 %v1372_v42, %v1084_v41 }
 0x217   : > { %v1418_v44 = vmul.f32 %v1377_v45, %v1087_v40  ;;  %v2856_v48 = vpop.f32.mrb[92].mxu1 }
 0x218   : > { %v2857_v14 = vpop.f32.mrb[93].mxu1 }
 0x219   : > { %v2858_v47 = vadd.f32 %v2857_v14, %v2856_v48  ;;  %v2859_v55 = vpop.f32.mrb[94].mxu1  ;;  %v1435_v54 = vpack.c.bf16 %v1418_v44, %v1417_v2 }
 0x21a   : > { %v2860_v50 = vpop.f32.mrb[95].mxu1 }
 0x21b   : > { %v1092_v51 = vadd.f32 %v2858_v47, %v3712_v12  ;;  %v2861_v57 = vadd.f32 %v2860_v50, %v2859_v55  ;;  %2954 = vmatprep.mubr.bf16.mxu0 %v1435_v54  ;;  %v3197_v12 = vld [vmem:[%s3723_s16 + $0x10] sm:$0xff]  }
 0x21d   : > { %v1095_v62 = vadd.f32 %v2861_v57, %v3714_v17  ;;  %v1419_v56 = vmul.f32 %v1382_v58, %v1092_v51  ;;  %v3199_v17 = vld [vmem:[%s3723_s16 + $0x20] sm:$0xff]  }
 0x21f   : > { %v1420_v59 = vmul.f32 %v1387_v52, %v1095_v62 }
 0x221   : > { %v1436_v49 = vpack.c.bf16 %v1420_v59, %v1419_v56 }
 0x223   : > { %2955 = vmatmul.mubr.bf16.gmra.mrb[60].mxu0 %v1436_v49 }
 0x224   : > { %2974 = vmatprep.mubr.bf16.mxu0 %v3195_v60 }
 0x22b   : > { %2975 = vmatmul.mubr.bf16.vlgmr.msra.gmra.mrb[32].mxu0 %v3196_v63 }
 0x22c   : > { %2978 = vmatprep.mubr.bf16.mxu0 %v3197_v12 }
 0x233   : > { %2979 = vmatmul.mubr.bf16.gmra.mrb[36].mxu0 %v3198_v0 }
 0x234   : > { %2982 = vmatprep.mubr.bf16.mxu0 %v3199_v17 }
 0x23b   : > { %2983 = vmatmul.mubr.bf16.gmra.mrb[40].mxu0 %v3200_v5 }
 0x23c   : > { %2986 = vmatprep.mubr.bf16.mxu0 %v3201_v4 }
 0x243   : > { %2987 = vmatmul.mubr.bf16.gmra.mrb[44].mxu0 %v3202_v3 }
 0x244   : > { %2990 = vmatprep.mubr.bf16.mxu0 %v3203_v22 }
 0x24b   : > { %2991 = vmatmul.mubr.bf16.gmra.mrb[48].mxu0 %v3204_v53 }
 0x24c   : > { %2994 = vmatprep.mubr.bf16.mxu0 %v3205_v7 }
 0x253   : > { %2995 = vmatmul.mubr.bf16.gmra.mrb[52].mxu0 %v3206_v6 }
 0x254   : > { %2998 = vmatprep.mubr.bf16.mxu0 %v3207_v9 }
 0x25b   : > { %2999 = vmatmul.mubr.bf16.gmra.mrb[56].mxu0 %v3208_v26 }
 0x25c   : > { %3002 = vmatprep.mubr.bf16.mxu0 %v3209_v8 }
 0x263   : > { %3003 = vmatmul.mubr.bf16.gmra.mrb[60].mxu0 %v3210_v11 }
 0x2fe   : > { %v2976_v15 = vpop.f32.mrb[32].mxu0 }
 0x2ff   : > { %v2029_v18 = vadd.f32 %v2976_v15, %v3775_v13  ;;  %v1893_v16 = vpop.f32.mrb[33].mxu0 }
 0x300   : > { %v2027_v20 = vadd.f32 %v3775_v13, %v1893_v16  ;;  %v2977_v23 = vpop.f32.mrb[34].mxu0 }
 0x301   : > { %v2030_v21 = vadd.f32 %v2977_v23, %v3775_v13  ;;  %v1896_v19 = vpop.f32.mrb[35].mxu0  ;;  %v2061_v25 = vmax.f32 %v2029_v18, 0.0 }
 0x302   : > { %v2028_v24 = vadd.f32 %v3775_v13, %v1896_v19  ;;  %v2059_v29 = vmax.f32 %v2027_v20, 0.0 }
 0x303   : > { %v2062_v61 = vmax.f32 %v2030_v21, 0.0 }
 0x304   : > { %v2060_v1 = vmax.f32 %v2028_v24, 0.0 }
 0x305   : > { %v2551_v34 = vpack.c.bf16 %v2062_v61, %v2061_v25 }
 0x306   : > { %v2546_v27 = vpack.c.bf16 %v2060_v1, %v2059_v29  ;;  %v2980_v30 = vpop.f32.mrb[36].mxu0 }
 0x307   : > { %2623 = vst [vmem:[%s3784_s15 + $0x8] sm:$0xff] %v2551_v34   ;;  %v2033_v28 = vadd.f32 %v2980_v30, %v3775_v13  ;;  %v1909_v38 = vpop.f32.mrb[37].mxu0 }
 0x308   : > { %2547 = vst [vmem:[%s3784_s15] sm:$0xff] %v2546_v27   ;;  %v2031_v32 = vadd.f32 %v3775_v13, %v1909_v38  ;;  %v2981_v33 = vpop.f32.mrb[38].mxu0 }
 0x309   : > { %v2034_v31 = vadd.f32 %v2981_v33, %v3775_v13  ;;  %v1912_v35 = vpop.f32.mrb[39].mxu0  ;;  %v2065_v36 = vmax.f32 %v2033_v28, 0.0 }
 0x30a   : > { %v2032_v43 = vadd.f32 %v3775_v13, %v1912_v35  ;;  %v2063_v39 = vmax.f32 %v2031_v32, 0.0 }
 0x30b   : > { %v2066_v37 = vmax.f32 %v2034_v31, 0.0 }
 0x30c   : > { %v2064_v46 = vmax.f32 %v2032_v43, 0.0 }
 0x30d   : > { %v2561_v41 = vpack.c.bf16 %v2066_v37, %v2065_v36 }
 0x30e   : > { %v2556_v10 = vpack.c.bf16 %v2064_v46, %v2063_v39  ;;  %v2984_v40 = vpop.f32.mrb[40].mxu0 }
 0x30f   : > { %2625 = vst [vmem:[%s3784_s15 + $0x18] sm:$0xff] %v2561_v41   ;;  %v2037_v42 = vadd.f32 %v2984_v40, %v3775_v13  ;;  %v1925_v45 = vpop.f32.mrb[41].mxu0 }
 0x310   : > { %2624 = vst [vmem:[%s3784_s15 + $0x10] sm:$0xff] %v2556_v10   ;;  %v2035_v2 = vadd.f32 %v3775_v13, %v1925_v45  ;;  %v2985_v44 = vpop.f32.mrb[42].mxu0 }
 0x311   : > { %v2038_v48 = vadd.f32 %v2985_v44, %v3775_v13  ;;  %v1928_v14 = vpop.f32.mrb[43].mxu0  ;;  %v2069_v55 = vmax.f32 %v2037_v42, 0.0 }
 0x312   : > { %v2036_v47 = vadd.f32 %v3775_v13, %v1928_v14  ;;  %v2067_v50 = vmax.f32 %v2035_v2, 0.0 }
 0x313   : > { %v2070_v54 = vmax.f32 %v2038_v48, 0.0 }
 0x314   : > { %v2068_v51 = vmax.f32 %v2036_v47, 0.0 }
 0x315   : > { %v2571_v57 = vpack.c.bf16 %v2070_v54, %v2069_v55 }
 0x316   : > { %v2566_v62 = vpack.c.bf16 %v2068_v51, %v2067_v50  ;;  %v2988_v58 = vpop.f32.mrb[44].mxu0 }
 0x317   : > { %2627 = vst [vmem:[%s3784_s15 + $0x28] sm:$0xff] %v2571_v57   ;;  %v2041_v52 = vadd.f32 %v2988_v58, %v3775_v13  ;;  %v1941_v56 = vpop.f32.mrb[45].mxu0 }
 0x318   : > { %2626 = vst [vmem:[%s3784_s15 + $0x20] sm:$0xff] %v2566_v62   ;;  %v2039_v59 = vadd.f32 %v3775_v13, %v1941_v56  ;;  %v2989_v60 = vpop.f32.mrb[46].mxu0 }
 0x319   : > { %v2042_v49 = vadd.f32 %v2989_v60, %v3775_v13  ;;  %v1944_v63 = vpop.f32.mrb[47].mxu0  ;;  %v2073_v0 = vmax.f32 %v2041_v52, 0.0 }
 0x31a   : > { %v2040_v12 = vadd.f32 %v3775_v13, %v1944_v63  ;;  %v2071_v5 = vmax.f32 %v2039_v59, 0.0 }
 0x31b   : > { %v2074_v17 = vmax.f32 %v2042_v49, 0.0 }
 0x31c   : > { %v2072_v4 = vmax.f32 %v2040_v12, 0.0 }
 0x31d   : > { %v2581_v3 = vpack.c.bf16 %v2074_v17, %v2073_v0 }
 0x31e   : > { %v2576_v22 = vpack.c.bf16 %v2072_v4, %v2071_v5  ;;  %v2992_v53 = vpop.f32.mrb[48].mxu0 }
 0x31f   : > { %2629 = vst [vmem:[%s3784_s15 + $0x38] sm:$0xff] %v2581_v3   ;;  %v2045_v7 = vadd.f32 %v2992_v53, %v3775_v13  ;;  %v1957_v6 = vpop.f32.mrb[49].mxu0 }
 0x320   : > { %2628 = vst [vmem:[%s3784_s15 + $0x30] sm:$0xff] %v2576_v22   ;;  %v2043_v9 = vadd.f32 %v3775_v13, %v1957_v6  ;;  %v2993_v26 = vpop.f32.mrb[50].mxu0 }
 0x321   : > { %v2046_v8 = vadd.f32 %v2993_v26, %v3775_v13  ;;  %v1960_v11 = vpop.f32.mrb[51].mxu0  ;;  %v2077_v18 = vmax.f32 %v2045_v7, 0.0 }
 0x322   : > { %v2044_v15 = vadd.f32 %v3775_v13, %v1960_v11  ;;  %v2075_v20 = vmax.f32 %v2043_v9, 0.0 }
 0x323   : > { %v2078_v16 = vmax.f32 %v2046_v8, 0.0 }
 0x324   : > { %v2076_v23 = vmax.f32 %v2044_v15, 0.0 }
 0x325   : > { %v2591_v21 = vpack.c.bf16 %v2078_v16, %v2077_v18 }
 0x326   : > { %v2586_v19 = vpack.c.bf16 %v2076_v23, %v2075_v20  ;;  %v2996_v24 = vpop.f32.mrb[52].mxu0 }
 0x327   : > { %2631 = vst [vmem:[%s3784_s15 + $0x48] sm:$0xff] %v2591_v21   ;;  %v2049_v25 = vadd.f32 %v2996_v24, %v3775_v13  ;;  %v1973_v61 = vpop.f32.mrb[53].mxu0 }
 0x328   : > { %2630 = vst [vmem:[%s3784_s15 + $0x40] sm:$0xff] %v2586_v19   ;;  %v2047_v29 = vadd.f32 %v3775_v13, %v1973_v61  ;;  %v2997_v1 = vpop.f32.mrb[54].mxu0 }
 0x329   : > { %v2050_v34 = vadd.f32 %v2997_v1, %v3775_v13  ;;  %v1976_v27 = vpop.f32.mrb[55].mxu0  ;;  %v2081_v28 = vmax.f32 %v2049_v25, 0.0 }
 0x32a   : > { %v2048_v30 = vadd.f32 %v3775_v13, %v1976_v27  ;;  %v2079_v32 = vmax.f32 %v2047_v29, 0.0 }
 0x32b   : > { %v2082_v38 = vmax.f32 %v2050_v34, 0.0 }
 0x32c   : > { %v2080_v33 = vmax.f32 %v2048_v30, 0.0 }
 0x32d   : > { %v2601_v31 = vpack.c.bf16 %v2082_v38, %v2081_v28 }
 0x32e   : > { %v2596_v35 = vpack.c.bf16 %v2080_v33, %v2079_v32  ;;  %v3000_v43 = vpop.f32.mrb[56].mxu0 }
 0x32f   : > { %2633 = vst [vmem:[%s3784_s15 + $0x58] sm:$0xff] %v2601_v31   ;;  %v2053_v36 = vadd.f32 %v3000_v43, %v3775_v13  ;;  %v1989_v37 = vpop.f32.mrb[57].mxu0 }
 0x330   : > { %2632 = vst [vmem:[%s3784_s15 + $0x50] sm:$0xff] %v2596_v35   ;;  %v2051_v39 = vadd.f32 %v3775_v13, %v1989_v37  ;;  %v3001_v46 = vpop.f32.mrb[58].mxu0 }
 0x331   : > { %v2054_v41 = vadd.f32 %v3001_v46, %v3775_v13  ;;  %v1992_v10 = vpop.f32.mrb[59].mxu0  ;;  %v2085_v42 = vmax.f32 %v2053_v36, 0.0 }
 0x332   : > { %v2052_v40 = vadd.f32 %v3775_v13, %v1992_v10  ;;  %v2083_v2 = vmax.f32 %v2051_v39, 0.0 }
 0x333   : > { %v2086_v45 = vmax.f32 %v2054_v41, 0.0 }
 0x334   : > { %v2084_v44 = vmax.f32 %v2052_v40, 0.0 }
 0x335   : > { %v2611_v48 = vpack.c.bf16 %v2086_v45, %v2085_v42 }
 0x336   : > { %v2606_v14 = vpack.c.bf16 %v2084_v44, %v2083_v2  ;;  %v3004_v47 = vpop.f32.mrb[60].mxu0 }
 0x337   : > { %2635 = vst [vmem:[%s3784_s15 + $0x68] sm:$0xff] %v2611_v48   ;;  %v2057_v55 = vadd.f32 %v3004_v47, %v3775_v13  ;;  %v2005_v54 = vpop.f32.mrb[61].mxu0 }
 0x338   : > { %2634 = vst [vmem:[%s3784_s15 + $0x60] sm:$0xff] %v2606_v14   ;;  %v2055_v50 = vadd.f32 %v3775_v13, %v2005_v54  ;;  %v3005_v51 = vpop.f32.mrb[62].mxu0 }
 0x339   : > { %v2058_v57 = vadd.f32 %v3005_v51, %v3775_v13  ;;  %v2008_v62 = vpop.f32.mrb[63].mxu0  ;;  %v2089_v52 = vmax.f32 %v2057_v55, 0.0 }
 0x33a   : > { %v2056_v58 = vadd.f32 %v3775_v13, %v2008_v62  ;;  %v2087_v59 = vmax.f32 %v2055_v50, 0.0 }
 0x33b   : > { %v2090_v56 = vmax.f32 %v2058_v57, 0.0 }
 0x33c   : > { %v2088_v60 = vmax.f32 %v2056_v58, 0.0 }
 0x33d   : > { %v2621_v49 = vpack.c.bf16 %v2090_v56, %v2089_v52 }
 0x33e   : > { %v2616_v63 = vpack.c.bf16 %v2088_v60, %v2087_v59 }
 0x33f   : > { %2637 = vst [vmem:[%s3784_s15 + $0x78] sm:$0xff] %v2621_v49  }
 0x340   : > { %2636 = vst [vmem:[%s3784_s15 + $0x70] sm:$0xff] %v2616_v63  }
 0x341   : > { %3308 = shalt.err (!%p3305_p7)
}
 0x342   : > { %s3309_s28 = scalar_lea.hbm %s3833_s19, 2048  ;;  %s3313_s16 = scalar_lea.hbm %s3893_s6, 4096 }
 0x343   : > { %p3310_p9 = scmp.ne.s32.totalorder %s3833_s19, %s3309_s28  ;;  %p3314_p1 = scmp.lt.u32.totalorder %s3833_s19, %s3893_s6 }
 0x344   : > { %p3315_p13 = scmp.lt.u32.totalorder %s3313_s16, %s3309_s28  ;;  %p3317_p10 = scmp.lt.u32.totalorder %s3309_s28, %s3833_s19 }
 0x345   : > { %p3311_p12 = pnand %p3310_p9, %p3913_p11 }
 0x346   : > { %p3316_p8 = por %p3315_p13, %p3314_p1 }
 0x347   : > { %p3312_p4 = pneg %p3311_p12 }
 0x348   : > { %p3318_p0 = por %p3317_p10, %p3316_p8 }
 0x34a   : > { %p3319_p2 = pnand %p3318_p0, %p3312_p4 }
 0x34c   : > { %3322 = shalt.err (!%p3319_p2)
}
 0x34d   : > { %s3390_s3 = smov 64   ;;  %s3391_s25 = smov 4  }
 0x34e   : > { %3066 = dma.vmem_to_hbm [thread:$0]  (%p3913_p11), %s3835_s12, 2048, %s3833_s19, %s3841_s24, %s3390_s3, %s3390_s3, %s3391_s25  }
 0x34f PF: > { %p3088_p3 = scmp.ge.s32.totalorder %s3381_s26, 2  ;;  %s2280_s15 = sand.u32 1, %s3361_s21  }
 0x350   : > { %p3914_p5 = scmp.ne.s32.totalorder %s3904_s9, 0  ;;  %s2281_s11 = scalar_lea.sflag [#allocation5], %s2280_s15 }
 0x352   : > { %p3079_p6 = pnand %p3088_p3, %p3914_p5 }
 0x354   : > { %3356 = dma.done.wait (!%p3079_p6), %s2281_s11, 2048  }
 0x355   : > { %3358 = vsyncadd (!%p3079_p6), %s2281_s11, 4294965248  ;;  %s21_s26 = sadd.s32 1, %s3381_s26   ;;  %s3915_s30 = sld [smem:[#allocation15_spill]] }
 0x356   : > { %p18_p7 = scmp.ge.s32.totalorder %s21_s26, 4   ;;  %s3916_s24 = sld [smem:[#allocation13_spill]] }
 0x357   : > { %s3917_s25 = sld [smem:[#allocation14_spill]]  ;;  %s3918_s21 = smov %s3365_s22 }
 0x358   : > { %s3919_s22 = smov %s3369_s23  ;;  %20 = sbr.rel (!%p18_p7) target bundleno = 8 (0x8), region = 105 }
 0x35b   : > { %s3920_s23 = smov %s3915_s30 }
 0x35f   :  { %2286 = vsyncpa [#allocation4], 1 }
 0x360   :  { %2288 = vsyncpa [#allocation4 + $0x1], 1 }
 0x361   :  { %2289 = vsyncpa [#allocation7], 1 }
 0x362   :  { %2290 = vsyncpa [#allocation5], 1 }
 0x363   :  { %2292 = vsyncpa [#allocation5 + $0x1], 1 }

</bundles_post_ra>
